<compile_context>
chip_gen: v7x
topology: tpu7x:2x2x1
jax: 0.10.0
libtpu: 0.0.40
codegen_flags: <defaults>
</compile_context>

<pallas_src>
import functools
import math

import jax
import jax.numpy as jnp
from jax.experimental import pallas as pl
from jax.experimental.pallas import tpu as pltpu


def _round_up(x, m):
    return (x + m - 1) // m * m


# ----------------------------------------------------------------------------
# Pallas kernel: one grid step = one direction x one chunk of time steps.
# Only the recurrent h @ W_hh work happens here; the input projection is
# precomputed in the wrapper and streamed in as ready-made gate tiles.
# ----------------------------------------------------------------------------
def _bilstm_chunk_kernel(seqlen_ref,              # (Bp, 1) int32
                         g_ref,                   # (1, TC, Bp, 4*Hp) gates(x)
                         whh_ref,                 # (1, Hp, 4*Hp)
                         *refs,                   # [out_all?], h_last, h, c
                         t_chunk, t_total, emit_all):
    if emit_all:
        out_ref, hlast_ref, h, c = refs
    else:
        hlast_ref, h, c = refs
        out_ref = None

    d = pl.program_id(0)              # 0 = forward, 1 = backward (time-reversed)
    tc = pl.program_id(1)             # time-chunk index
    n_chunks = pl.num_programs(1)
    Hp = h.shape[-1]

    @pl.when(tc == 0)
    def _():
        h[...] = jnp.zeros_like(h)
        c[...] = jnp.zeros_like(c)

    seqlen = seqlen_ref[...]          # (Bp, 1) int32
    whh = whh_ref[0]                  # (Hp, 4*Hp), this direction's W_hh
    base = tc * t_chunk

    for j in range(t_chunk):          # statically unrolled chunk
        s = base + j
        # original time index: forward -> s ; backward -> t_total - 1 - s
        t_orig = s + d * (t_total - 1 - 2 * s)
        valid = t_orig < seqlen                      # (Bp, 1) bool

        gates = jnp.dot(h[...].astype(whh.dtype), whh,
                        preferred_element_type=jnp.float32)
        gates = gates + g_ref[0, j].astype(jnp.float32)

        # PyTorch gate order i, f, g, o; each slice is a 128-lane-aligned block.
        i = jax.nn.sigmoid(gates[:, 0 * Hp:1 * Hp])
        f = jax.nn.sigmoid(gates[:, 1 * Hp:2 * Hp])
        g = jnp.tanh(gates[:, 2 * Hp:3 * Hp])
        o = jax.nn.sigmoid(gates[:, 3 * Hp:4 * Hp])
        c_new = f * c[...] + i * g
        h_new = o * jnp.tanh(c_new)

        h[...] = jnp.where(valid, h_new, h[...])
        c[...] = jnp.where(valid, c_new, c[...])
        if emit_all:
            out_ref[0, j] = jnp.where(valid, h_new, 0.0)

    @pl.when(tc == n_chunks - 1)
    def _():
        hlast_ref[0] = h[...]


# ----------------------------------------------------------------------------
# Wrapper: hoisted input projection, lane/sublane padding, pallas_call.
# ----------------------------------------------------------------------------
def rnn_layer_forward(params, inputs, mask=None, out_type='last',
                      t_chunk=32, compute_dtype=jnp.float32):
    assert inputs.ndim == 3
    assert out_type in ('last', 'all')
    B, T, D = inputs.shape
    H = params['n_hidden']
    assert D == params['input_size']

    Hp = _round_up(H, 128)            # lane-aligned hidden width
    Bp = _round_up(B, 8)              # sublane-aligned batch
    TC = min(t_chunk, T)              # time steps per grid iteration
    T_pad = _round_up(T, TC)
    n_chunks = T_pad // TC
    emit_all = (out_type == 'all')

    if mask is not None:
        seq_len = mask.sum(axis=-1).astype(jnp.int32)
    else:
        # faithful to the PyTorch module: mask=None => every sequence length 1
        seq_len = jnp.ones((B,), jnp.int32)
    seqlen_p = jnp.zeros((Bp, 1), jnp.int32).at[:B, 0].set(seq_len)

    x = inputs.astype(jnp.float32)

    # ---- hoisted, time-invariant input projection: one big matmul/direction.
    # Each gate is scattered into its own Hp-wide, lane-aligned block; padded
    # gate columns get zero weights & biases so the padded hidden lanes stay 0.
    def gate_stream(w_ih, b_ih, b_hh):
        gx = jnp.einsum('btd,dg->btg', x.astype(compute_dtype),
                        w_ih.T.astype(compute_dtype)).astype(jnp.float32)
        gx = gx + (b_ih + b_hh)[None, None, :]                 # (B, T, 4H)
        gx = gx.reshape(B, T, 4, H)
        gp = jnp.zeros((B, T, 4, Hp), jnp.float32).at[..., :H].set(gx)
        gp = gp.reshape(B, T, 4 * Hp)
        gp = jnp.pad(gp, ((0, Bp - B), (0, T_pad - T), (0, 0)))
        return jnp.transpose(gp, (1, 0, 2)).astype(compute_dtype)  # (T_pad,Bp,4Hp)

    def pack_whh(w_hh):
        w = w_hh.T.reshape(H, 4, H)                            # (H, 4, H)
        wp = jnp.zeros((Hp, 4, Hp), jnp.float32).at[:H, :, :H].set(w)
        return wp.reshape(Hp, 4 * Hp).astype(compute_dtype)

    g_f = gate_stream(params['w_ih_f'], params['b_ih_f'], params['b_hh_f'])
    g_b = gate_stream(params['w_ih_b'], params['b_ih_b'], params['b_hh_b'])
    # backward stream pre-reversed in time so both directions read block `tc`
    gates = jnp.stack([g_f, jnp.flip(g_b, axis=0)], axis=0)    # (2,T_pad,Bp,4Hp)
    whh = jnp.stack([pack_whh(params['w_hh_f']),
                     pack_whh(params['w_hh_b'])], axis=0)      # (2, Hp, 4Hp)

    in_specs = [
        pl.BlockSpec((Bp, 1), lambda d, tc: (0, 0)),                     # seqlen
        pl.BlockSpec((1, TC, Bp, 4 * Hp), lambda d, tc: (d, tc, 0, 0)),  # gates(x)
        pl.BlockSpec((1, Hp, 4 * Hp), lambda d, tc: (d, 0, 0)),          # W_hh
        # (weights are grid-invariant per direction; tiny here, so default
        #  double-buffering is fine — use pipeline_mode=pl.Buffered(1) for big H)
    ]
    out_specs = []
    out_shape = []
    if emit_all:
        out_specs.append(pl.BlockSpec((1, TC, Bp, Hp),
                                      lambda d, tc: (d, tc, 0, 0)))
        out_shape.append(jax.ShapeDtypeStruct((2, T_pad, Bp, Hp), jnp.float32))
    out_specs.append(pl.BlockSpec((1, Bp, Hp), lambda d, tc: (d, 0, 0)))
    out_shape.append(jax.ShapeDtypeStruct((2, Bp, Hp), jnp.float32))

    grid_spec = pltpu.PrefetchScalarGridSpec(
        num_scalar_prefetch=0,
        grid=(2, n_chunks),                       # (direction, time-chunk)
        in_specs=in_specs,
        out_specs=out_specs,
        scratch_shapes=[pltpu.VMEM((Bp, Hp), jnp.float32)] * 2,  # h, c state
    )

    outs = pl.pallas_call(
        functools.partial(_bilstm_chunk_kernel,
                          t_chunk=TC, t_total=T_pad, emit_all=emit_all),
        grid_spec=grid_spec,
        out_shape=tuple(out_shape),
        compiler_params=pltpu.CompilerParams(
            # direction axis is independent -> splits across the 2 TCs on v7x;
            # time axis is the recurrence -> must stay sequential.
            dimension_semantics=("parallel", "arbitrary")),
    )(seqlen_p, gates, whh)

    if emit_all:
        out_all, h_last = outs
    else:
        (h_last,) = outs

    if out_type == 'last':
        return jnp.concatenate([h_last[0, :B, :H], h_last[1, :B, :H]], axis=-1)

    out_f = out_all[0, :T, :B, :H]                          # (T, B, H)
    out_b = jnp.flip(out_all[1], axis=0)[:T, :B, :H]        # un-reverse time
    out = jnp.concatenate([out_f, out_b], axis=-1)          # (T, B, 2H)
    return jnp.transpose(out, (1, 0, 2))                    # (B, T, 2H)


# ----------------------------------------------------------------------------
# Deterministic parameter init (matches nn.LSTM default U(-1/sqrt(H), 1/sqrt(H)))
# ----------------------------------------------------------------------------
def init_params(key, input_size, n_hidden):
    bound = 1.0 / math.sqrt(n_hidden)
    keys = jax.random.split(key, 8)

    def u(k_, shape):
        return jax.random.uniform(k_, shape, jnp.float32, -bound, bound)

    return {
        'input_size': input_size,
        'n_hidden': n_hidden,
        'w_ih_f': u(keys[0], (4 * n_hidden, input_size)),
        'w_hh_f': u(keys[1], (4 * n_hidden, n_hidden)),
        'b_ih_f': u(keys[2], (4 * n_hidden,)),
        'b_hh_f': u(keys[3], (4 * n_hidden,)),
        'w_ih_b': u(keys[4], (4 * n_hidden, input_size)),
        'w_hh_b': u(keys[5], (4 * n_hidden, n_hidden)),
        'b_ih_b': u(keys[6], (4 * n_hidden,)),
        'b_hh_b': u(keys[7], (4 * n_hidden,)),
    }


# ----------------------------------------------------------------------------
# Pure-JAX reference (mirrors PyTorch packed bidirectional LSTM semantics)
# ----------------------------------------------------------------------------
def _ref_forward(params, inputs, mask):
    B, T, D = inputs.shape
    H = params['n_hidden']
    seq_len = mask.sum(axis=-1).astype(jnp.int32).reshape(B, 1)
    wih_f, whh_f = params['w_ih_f'].T, params['w_hh_f'].T
    bf = params['b_ih_f'] + params['b_hh_f']
    wih_b, whh_b = params['w_ih_b'].T, params['w_hh_b'].T
    bb = params['b_ih_b'] + params['b_hh_b']

    def cell(x, h, c, wih, whh, b):
        g = x @ wih + h @ whh + b
        i = jax.nn.sigmoid(g[:, :H])
        f = jax.nn.sigmoid(g[:, H:2 * H])
        gg = jnp.tanh(g[:, 2 * H:3 * H])
        o = jax.nn.sigmoid(g[:, 3 * H:])
        c_new = f * c + i * gg
        return o * jnp.tanh(c_new), c_new

    hf = cf = hb = cb = jnp.zeros((B, H), jnp.float32)
    outs_f, outs_b = [], [None] * T
    for t in range(T):
        valid = t < seq_len
        hn, cn = cell(inputs[:, t], hf, cf, wih_f, whh_f, bf)
        outs_f.append(jnp.where(valid, hn, 0.0))
        hf = jnp.where(valid, hn, hf)
        cf = jnp.where(valid, cn, cf)
    for t in range(T - 1, -1, -1):
        valid = t < seq_len
        hn, cn = cell(inputs[:, t], hb, cb, wih_b, whh_b, bb)
        outs_b[t] = jnp.where(valid, hn, 0.0)
        hb = jnp.where(valid, hn, hb)
        cb = jnp.where(valid, cn, cb)
    h_last = jnp.concatenate([hf, hb], axis=-1)
    outputs = jnp.concatenate(
        [jnp.stack(outs_f, axis=1), jnp.stack(outs_b, axis=1)], axis=-1)
    return h_last, outputs


if __name__ == "__main__":
    B, T, D, H = 2, 8, 16, 32

    key = jax.random.PRNGKey(0)
    k_param, k_x = jax.random.split(key)
    params = init_params(k_param, input_size=D, n_hidden=H)

    inputs = jax.random.normal(k_x, (B, T, D), jnp.float32)
    lengths = jnp.array([T, 5], jnp.int32)                 # variable seq lengths
    mask = (jnp.arange(T)[None, :] < lengths[:, None]).astype(jnp.float32)

    h_last = rnn_layer_forward(params, inputs, mask, out_type='last')
    outputs = rnn_layer_forward(params, inputs, mask, out_type='all')
    jax.block_until_ready((h_last, outputs))

    # sanity check against the pure-JAX reference
    h_ref, out_ref = _ref_forward(params, inputs, mask)
    assert h_last.shape == (B, 2 * H)
    assert outputs.shape == (B, T, 2 * H)
    assert jnp.allclose(h_last, h_ref, atol=1e-3), "h_last mismatch"
    assert jnp.allclose(outputs, out_ref, atol=1e-3), "outputs mismatch"

    print("KERNEL_OK")
</pallas_src>

<mosaic_0001>
module attributes {stable_mosaic.version = 11 : i64} {
  func.func @_bilstm_chunk_kernel(%arg0: i32, %arg1: i32, %arg2: memref<8x1xi32, #tpu.memory_space<vmem>>, %arg3: memref<1x8x8x512xf32, #tpu.memory_space<vmem>>, %arg4: memref<1x128x512xf32, #tpu.memory_space<vmem>>, %arg5: memref<1x8x128xf32, #tpu.memory_space<vmem>>, %arg6: memref<8x128xf32, #tpu.memory_space<vmem>>, %arg7: memref<8x128xf32, #tpu.memory_space<vmem>>) attributes {dimension_semantics = [#tpu.dimension_semantics<parallel>, #tpu.dimension_semantics<arbitrary>], iteration_bounds = array<i64: 2, 1>, scalar_prefetch = 0 : i64, scratch_operands = 2 : i64, tpu.core_type = #tpu.core_type<tc>, window_params = [{pipeline_mode = #tpu.pipeline_mode<synchronous>, transform_indices = @transform_0, window_bounds = array<i64: 8, 1>}, {transform_indices = @transform_1, window_bounds = array<i64: 1, 8, 8, 512>}, {transform_indices = @transform_2, window_bounds = array<i64: 1, 128, 512>}, {transform_indices = @transform_3, window_bounds = array<i64: 1, 8, 128>}]} {
    %c0_i32 = arith.constant 0 : i32
    %0 = arith.cmpi eq, %arg1, %c0_i32 : i32
    %1 = arith.extui %0 : i1 to i32
    %c0_i32_0 = arith.constant 0 : i32
    %2 = arith.cmpi ne, %1, %c0_i32_0 : i32
    scf.if %2 {
      %cst_176 = arith.constant 0.000000e+00 : f32
      %394 = vector.broadcast %cst_176 : f32 to vector<8x128xf32>
      %c0_177 = arith.constant 0 : index
      %c0_178 = arith.constant 0 : index
      %395 = vector.load %arg6[%c0_177, %c0_178] : memref<8x128xf32, #tpu.memory_space<vmem>>, vector<8x128xf32>
      tpu.vector_store %arg6[%c0_177, %c0_178], %394 {strides = array<i32>} : memref<8x128xf32, #tpu.memory_space<vmem>>, vector<8x128xf32>,
      %cst_179 = arith.constant 0.000000e+00 : f32
      %396 = vector.broadcast %cst_179 : f32 to vector<8x128xf32>
      %c0_180 = arith.constant 0 : index
      %c0_181 = arith.constant 0 : index
      %397 = vector.load %arg7[%c0_180, %c0_181] : memref<8x128xf32, #tpu.memory_space<vmem>>, vector<8x128xf32>
      tpu.vector_store %arg7[%c0_180, %c0_181], %396 {strides = array<i32>} : memref<8x128xf32, #tpu.memory_space<vmem>>, vector<8x128xf32>,
    } else {
    }
    %c0 = arith.constant 0 : index
    %c0_1 = arith.constant 0 : index
    %3 = vector.load %arg2[%c0, %c0_1] : memref<8x1xi32, #tpu.memory_space<vmem>>, vector<8x1xi32>
    %c0_2 = arith.constant 0 : index
    %c0_3 = arith.constant 0 : index
    %c0_4 = arith.constant 0 : index
    %4 = vector.load %arg4[%c0_2, %c0_3, %c0_4] : memref<1x128x512xf32, #tpu.memory_space<vmem>>, vector<1x128x512xf32>
    %5 = vector.shape_cast %4 : vector<1x128x512xf32> to vector<128x512xf32>
    %c8_i32 = arith.constant 8 : i32
    %6 = arith.muli %arg1, %c8_i32 : i32
    %c0_i32_5 = arith.constant 0 : i32
    %7 = arith.addi %6, %c0_i32_5 : i32
    %c2_i32 = arith.constant 2 : i32
    %8 = arith.muli %c2_i32, %7 : i32
    %c7_i32 = arith.constant 7 : i32
    %9 = arith.subi %c7_i32, %8 : i32
    %10 = arith.muli %arg0, %9 : i32
    %11 = arith.addi %7, %10 : i32
    %12 = vector.broadcast %11 : i32 to vector<8x1xi32>
    %13 = arith.cmpi slt, %12, %3 : vector<8x1xi32>
    %c0_6 = arith.constant 0 : index
    %c0_7 = arith.constant 0 : index
    %14 = vector.load %arg6[%c0_6, %c0_7] : memref<8x128xf32, #tpu.memory_space<vmem>>, vector<8x128xf32>
    %cst = arith.constant dense<0.000000e+00> : vector<8x512xf32>
    %15 = tpu.matmul %14, %5, %cst {dimension_numbers = #tpu.dot_dimension_numbers<[1], [0], [0], [1], [0, 0, 1, 1], [], []>} : vector<8x128xf32>, vector<128x512xf32>, vector<8x512xf32> -> vector<8x512xf32>
    %c0_8 = arith.constant 0 : index
    %c0_9 = arith.constant 0 : index
    %c0_10 = arith.constant 0 : index
    %c0_11 = arith.constant 0 : index
    %16 = vector.load %arg3[%c0_8, %c0_9, %c0_10, %c0_11] : memref<1x8x8x512xf32, #tpu.memory_space<vmem>>, vector<1x1x8x512xf32>
    %17 = vector.shape_cast %16 : vector<1x1x8x512xf32> to vector<8x512xf32>
    %18 = arith.addf %15, %17 : vector<8x512xf32>
    %19 = vector.extract_strided_slice %18 {offsets = [0, 0], sizes = [8, 128], strides = [1, 1]} : vector<8x512xf32> to vector<8x128xf32>
    %20 = arith.negf %19 : vector<8x128xf32>
    %21 = math.exp %20 : vector<8x128xf32>
    %cst_12 = arith.constant 1.000000e+00 : f32
    %22 = vector.broadcast %cst_12 : f32 to vector<8x128xf32>
    %23 = arith.addf %22, %21 : vector<8x128xf32>
    %24 = arith.divf %22, %23 : vector<8x128xf32>
    %25 = vector.extract_strided_slice %18 {offsets = [0, 128], sizes = [8, 128], strides = [1, 1]} : vector<8x512xf32> to vector<8x128xf32>
    %26 = arith.negf %25 : vector<8x128xf32>
    %27 = math.exp %26 : vector<8x128xf32>
    %cst_13 = arith.constant 1.000000e+00 : f32
    %28 = vector.broadcast %cst_13 : f32 to vector<8x128xf32>
    %29 = arith.addf %28, %27 : vector<8x128xf32>
    %30 = arith.divf %28, %29 : vector<8x128xf32>
    %31 = vector.extract_strided_slice %18 {offsets = [0, 256], sizes = [8, 128], strides = [1, 1]} : vector<8x512xf32> to vector<8x128xf32>
    %32 = math.tanh %31 : vector<8x128xf32>
    %33 = vector.extract_strided_slice %18 {offsets = [0, 384], sizes = [8, 128], strides = [1, 1]} : vector<8x512xf32> to vector<8x128xf32>
    %34 = arith.negf %33 : vector<8x128xf32>
    %35 = math.exp %34 : vector<8x128xf32>
    %cst_14 = arith.constant 1.000000e+00 : f32
    %36 = vector.broadcast %cst_14 : f32 to vector<8x128xf32>
    %37 = arith.addf %36, %35 : vector<8x128xf32>
    %38 = arith.divf %36, %37 : vector<8x128xf32>
    %c0_15 = arith.constant 0 : index
    %c0_16 = arith.constant 0 : index
    %39 = vector.load %arg7[%c0_15, %c0_16] : memref<8x128xf32, #tpu.memory_space<vmem>>, vector<8x128xf32>
    %40 = arith.mulf %30, %39 : vector<8x128xf32>
    %41 = arith.mulf %24, %32 : vector<8x128xf32>
    %42 = arith.addf %40, %41 : vector<8x128xf32>
    %43 = math.tanh %42 : vector<8x128xf32>
    %44 = arith.mulf %38, %43 : vector<8x128xf32>
    %c0_17 = arith.constant 0 : index
    %c0_18 = arith.constant 0 : index
    %45 = vector.load %arg6[%c0_17, %c0_18] : memref<8x128xf32, #tpu.memory_space<vmem>>, vector<8x128xf32>
    %46 = vector.shape_cast %13 : vector<8x1xi1> to vector<8x1xi1>
    %47 = vector.broadcast %46 : vector<8x1xi1> to vector<8x128xi1>
    %48 = arith.select %47, %44, %45 : vector<8x128xi1>, vector<8x128xf32>
    %c0_19 = arith.constant 0 : index
    %c0_20 = arith.constant 0 : index
    %49 = vector.load %arg6[%c0_19, %c0_20] : memref<8x128xf32, #tpu.memory_space<vmem>>, vector<8x128xf32>
    tpu.vector_store %arg6[%c0_19, %c0_20], %48 {strides = array<i32>} : memref<8x128xf32, #tpu.memory_space<vmem>>, vector<8x128xf32>,
    %c0_21 = arith.constant 0 : index
    %c0_22 = arith.constant 0 : index
    %50 = vector.load %arg7[%c0_21, %c0_22] : memref<8x128xf32, #tpu.memory_space<vmem>>, vector<8x128xf32>
    %51 = vector.shape_cast %13 : vector<8x1xi1> to vector<8x1xi1>
    %52 = vector.broadcast %51 : vector<8x1xi1> to vector<8x128xi1>
    %53 = arith.select %52, %42, %50 : vector<8x128xi1>, vector<8x128xf32>
    %c0_23 = arith.constant 0 : index
    %c0_24 = arith.constant 0 : index
    %54 = vector.load %arg7[%c0_23, %c0_24] : memref<8x128xf32, #tpu.memory_space<vmem>>, vector<8x128xf32>
    tpu.vector_store %arg7[%c0_23, %c0_24], %53 {strides = array<i32>} : memref<8x128xf32, #tpu.memory_space<vmem>>, vector<8x128xf32>,
    %c1_i32 = arith.constant 1 : i32
    %55 = arith.addi %6, %c1_i32 : i32
    %c2_i32_25 = arith.constant 2 : i32
    %56 = arith.muli %c2_i32_25, %55 : i32
    %c7_i32_26 = arith.constant 7 : i32
    %57 = arith.subi %c7_i32_26, %56 : i32
    %58 = arith.muli %arg0, %57 : i32
    %59 = arith.addi %55, %58 : i32
    %60 = vector.broadcast %59 : i32 to vector<8x1xi32>
    %61 = arith.cmpi slt, %60, %3 : vector<8x1xi32>
    %c0_27 = arith.constant 0 : index
    %c0_28 = arith.constant 0 : index
    %62 = vector.load %arg6[%c0_27, %c0_28] : memref<8x128xf32, #tpu.memory_space<vmem>>, vector<8x128xf32>
    %cst_29 = arith.constant dense<0.000000e+00> : vector<8x512xf32>
    %63 = tpu.matmul %62, %5, %cst_29 {dimension_numbers = #tpu.dot_dimension_numbers<[1], [0], [0], [1], [0, 0, 1, 1], [], []>} : vector<8x128xf32>, vector<128x512xf32>, vector<8x512xf32> -> vector<8x512xf32>
    %c0_30 = arith.constant 0 : index
    %c1 = arith.constant 1 : index
    %c0_31 = arith.constant 0 : index
    %c0_32 = arith.constant 0 : index
    %64 = vector.load %arg3[%c0_30, %c1, %c0_31, %c0_32] : memref<1x8x8x512xf32, #tpu.memory_space<vmem>>, vector<1x1x8x512xf32>
    %65 = vector.shape_cast %64 : vector<1x1x8x512xf32> to vector<8x512xf32>
    %66 = arith.addf %63, %65 : vector<8x512xf32>
    %67 = vector.extract_strided_slice %66 {offsets = [0, 0], sizes = [8, 128], strides = [1, 1]} : vector<8x512xf32> to vector<8x128xf32>
    %68 = arith.negf %67 : vector<8x128xf32>
    %69 = math.exp %68 : vector<8x128xf32>
    %cst_33 = arith.constant 1.000000e+00 : f32
    %70 = vector.broadcast %cst_33 : f32 to vector<8x128xf32>
    %71 = arith.addf %70, %69 : vector<8x128xf32>
    %72 = arith.divf %70, %71 : vector<8x128xf32>
    %73 = vector.extract_strided_slice %66 {offsets = [0, 128], sizes = [8, 128], strides = [1, 1]} : vector<8x512xf32> to vector<8x128xf32>
    %74 = arith.negf %73 : vector<8x128xf32>
    %75 = math.exp %74 : vector<8x128xf32>
    %cst_34 = arith.constant 1.000000e+00 : f32
    %76 = vector.broadcast %cst_34 : f32 to vector<8x128xf32>
    %77 = arith.addf %76, %75 : vector<8x128xf32>
    %78 = arith.divf %76, %77 : vector<8x128xf32>
    %79 = vector.extract_strided_slice %66 {offsets = [0, 256], sizes = [8, 128], strides = [1, 1]} : vector<8x512xf32> to vector<8x128xf32>
    %80 = math.tanh %79 : vector<8x128xf32>
    %81 = vector.extract_strided_slice %66 {offsets = [0, 384], sizes = [8, 128], strides = [1, 1]} : vector<8x512xf32> to vector<8x128xf32>
    %82 = arith.negf %81 : vector<8x128xf32>
    %83 = math.exp %82 : vector<8x128xf32>
    %cst_35 = arith.constant 1.000000e+00 : f32
    %84 = vector.broadcast %cst_35 : f32 to vector<8x128xf32>
    %85 = arith.addf %84, %83 : vector<8x128xf32>
    %86 = arith.divf %84, %85 : vector<8x128xf32>
    %c0_36 = arith.constant 0 : index
    %c0_37 = arith.constant 0 : index
    %87 = vector.load %arg7[%c0_36, %c0_37] : memref<8x128xf32, #tpu.memory_space<vmem>>, vector<8x128xf32>
    %88 = arith.mulf %78, %87 : vector<8x128xf32>
    %89 = arith.mulf %72, %80 : vector<8x128xf32>
    %90 = arith.addf %88, %89 : vector<8x128xf32>
    %91 = math.tanh %90 : vector<8x128xf32>
    %92 = arith.mulf %86, %91 : vector<8x128xf32>
    %c0_38 = arith.constant 0 : index
    %c0_39 = arith.constant 0 : index
    %93 = vector.load %arg6[%c0_38, %c0_39] : memref<8x128xf32, #tpu.memory_space<vmem>>, vector<8x128xf32>
    %94 = vector.shape_cast %61 : vector<8x1xi1> to vector<8x1xi1>
    %95 = vector.broadcast %94 : vector<8x1xi1> to vector<8x128xi1>
    %96 = arith.select %95, %92, %93 : vector<8x128xi1>, vector<8x128xf32>
    %c0_40 = arith.constant 0 : index
    %c0_41 = arith.constant 0 : index
    %97 = vector.load %arg6[%c0_40, %c0_41] : memref<8x128xf32, #tpu.memory_space<vmem>>, vector<8x128xf32>
    tpu.vector_store %arg6[%c0_40, %c0_41], %96 {strides = array<i32>} : memref<8x128xf32, #tpu.memory_space<vmem>>, vector<8x128xf32>,
    %c0_42 = arith.constant 0 : index
    %c0_43 = arith.constant 0 : index
    %98 = vector.load %arg7[%c0_42, %c0_43] : memref<8x128xf32, #tpu.memory_space<vmem>>, vector<8x128xf32>
    %99 = vector.shape_cast %61 : vector<8x1xi1> to vector<8x1xi1>
    %100 = vector.broadcast %99 : vector<8x1xi1> to vector<8x128xi1>
    %101 = arith.select %100, %90, %98 : vector<8x128xi1>, vector<8x128xf32>
    %c0_44 = arith.constant 0 : index
    %c0_45 = arith.constant 0 : index
    %102 = vector.load %arg7[%c0_44, %c0_45] : memref<8x128xf32, #tpu.memory_space<vmem>>, vector<8x128xf32>
    tpu.vector_store %arg7[%c0_44, %c0_45], %101 {strides = array<i32>} : memref<8x128xf32, #tpu.memory_space<vmem>>, vector<8x128xf32>,
    %c2_i32_46 = arith.constant 2 : i32
    %103 = arith.addi %6, %c2_i32_46 : i32
    %c2_i32_47 = arith.constant 2 : i32
    %104 = arith.muli %c2_i32_47, %103 : i32
    %c7_i32_48 = arith.constant 7 : i32
    %105 = arith.subi %c7_i32_48, %104 : i32
    %106 = arith.muli %arg0, %105 : i32
    %107 = arith.addi %103, %106 : i32
    %108 = vector.broadcast %107 : i32 to vector<8x1xi32>
    %109 = arith.cmpi slt, %108, %3 : vector<8x1xi32>
    %c0_49 = arith.constant 0 : index
    %c0_50 = arith.constant 0 : index
    %110 = vector.load %arg6[%c0_49, %c0_50] : memref<8x128xf32, #tpu.memory_space<vmem>>, vector<8x128xf32>
    %cst_51 = arith.constant dense<0.000000e+00> : vector<8x512xf32>
    %111 = tpu.matmul %110, %5, %cst_51 {dimension_numbers = #tpu.dot_dimension_numbers<[1], [0], [0], [1], [0, 0, 1, 1], [], []>} : vector<8x128xf32>, vector<128x512xf32>, vector<8x512xf32> -> vector<8x512xf32>
    %c0_52 = arith.constant 0 : index
    %c2 = arith.constant 2 : index
    %c0_53 = arith.constant 0 : index
    %c0_54 = arith.constant 0 : index
    %112 = vector.load %arg3[%c0_52, %c2, %c0_53, %c0_54] : memref<1x8x8x512xf32, #tpu.memory_space<vmem>>, vector<1x1x8x512xf32>
    %113 = vector.shape_cast %112 : vector<1x1x8x512xf32> to vector<8x512xf32>
    %114 = arith.addf %111, %113 : vector<8x512xf32>
    %115 = vector.extract_strided_slice %114 {offsets = [0, 0], sizes = [8, 128], strides = [1, 1]} : vector<8x512xf32> to vector<8x128xf32>
    %116 = arith.negf %115 : vector<8x128xf32>
    %117 = math.exp %116 : vector<8x128xf32>
    %cst_55 = arith.constant 1.000000e+00 : f32
    %118 = vector.broadcast %cst_55 : f32 to vector<8x128xf32>
    %119 = arith.addf %118, %117 : vector<8x128xf32>
    %120 = arith.divf %118, %119 : vector<8x128xf32>
    %121 = vector.extract_strided_slice %114 {offsets = [0, 128], sizes = [8, 128], strides = [1, 1]} : vector<8x512xf32> to vector<8x128xf32>
    %122 = arith.negf %121 : vector<8x128xf32>
    %123 = math.exp %122 : vector<8x128xf32>
    %cst_56 = arith.constant 1.000000e+00 : f32
    %124 = vector.broadcast %cst_56 : f32 to vector<8x128xf32>
    %125 = arith.addf %124, %123 : vector<8x128xf32>
    %126 = arith.divf %124, %125 : vector<8x128xf32>
    %127 = vector.extract_strided_slice %114 {offsets = [0, 256], sizes = [8, 128], strides = [1, 1]} : vector<8x512xf32> to vector<8x128xf32>
    %128 = math.tanh %127 : vector<8x128xf32>
    %129 = vector.extract_strided_slice %114 {offsets = [0, 384], sizes = [8, 128], strides = [1, 1]} : vector<8x512xf32> to vector<8x128xf32>
    %130 = arith.negf %129 : vector<8x128xf32>
    %131 = math.exp %130 : vector<8x128xf32>
    %cst_57 = arith.constant 1.000000e+00 : f32
    %132 = vector.broadcast %cst_57 : f32 to vector<8x128xf32>
    %133 = arith.addf %132, %131 : vector<8x128xf32>
    %134 = arith.divf %132, %133 : vector<8x128xf32>
    %c0_58 = arith.constant 0 : index
    %c0_59 = arith.constant 0 : index
    %135 = vector.load %arg7[%c0_58, %c0_59] : memref<8x128xf32, #tpu.memory_space<vmem>>, vector<8x128xf32>
    %136 = arith.mulf %126, %135 : vector<8x128xf32>
    %137 = arith.mulf %120, %128 : vector<8x128xf32>
    %138 = arith.addf %136, %137 : vector<8x128xf32>
    %139 = math.tanh %138 : vector<8x128xf32>
    %140 = arith.mulf %134, %139 : vector<8x128xf32>
    %c0_60 = arith.constant 0 : index
    %c0_61 = arith.constant 0 : index
    %141 = vector.load %arg6[%c0_60, %c0_61] : memref<8x128xf32, #tpu.memory_space<vmem>>, vector<8x128xf32>
    %142 = vector.shape_cast %109 : vector<8x1xi1> to vector<8x1xi1>
    %143 = vector.broadcast %142 : vector<8x1xi1> to vector<8x128xi1>
    %144 = arith.select %143, %140, %141 : vector<8x128xi1>, vector<8x128xf32>
    %c0_62 = arith.constant 0 : index
    %c0_63 = arith.constant 0 : index
    %145 = vector.load %arg6[%c0_62, %c0_63] : memref<8x128xf32, #tpu.memory_space<vmem>>, vector<8x128xf32>
    tpu.vector_store %arg6[%c0_62, %c0_63], %144 {strides = array<i32>} : memref<8x128xf32, #tpu.memory_space<vmem>>, vector<8x128xf32>,
    %c0_64 = arith.constant 0 : index
    %c0_65 = arith.constant 0 : index
    %146 = vector.load %arg7[%c0_64, %c0_65] : memref<8x128xf32, #tpu.memory_space<vmem>>, vector<8x128xf32>
    %147 = vector.shape_cast %109 : vector<8x1xi1> to vector<8x1xi1>
    %148 = vector.broadcast %147 : vector<8x1xi1> to vector<8x128xi1>
    %149 = arith.select %148, %138, %146 : vector<8x128xi1>, vector<8x128xf32>
    %c0_66 = arith.constant 0 : index
    %c0_67 = arith.constant 0 : index
    %150 = vector.load %arg7[%c0_66, %c0_67] : memref<8x128xf32, #tpu.memory_space<vmem>>, vector<8x128xf32>
    tpu.vector_store %arg7[%c0_66, %c0_67], %149 {strides = array<i32>} : memref<8x128xf32, #tpu.memory_space<vmem>>, vector<8x128xf32>,
    %c3_i32 = arith.constant 3 : i32
    %151 = arith.addi %6, %c3_i32 : i32
    %c2_i32_68 = arith.constant 2 : i32
    %152 = arith.muli %c2_i32_68, %151 : i32
    %c7_i32_69 = arith.constant 7 : i32
    %153 = arith.subi %c7_i32_69, %152 : i32
    %154 = arith.muli %arg0, %153 : i32
    %155 = arith.addi %151, %154 : i32
    %156 = vector.broadcast %155 : i32 to vector<8x1xi32>
    %157 = arith.cmpi slt, %156, %3 : vector<8x1xi32>
    %c0_70 = arith.constant 0 : index
    %c0_71 = arith.constant 0 : index
    %158 = vector.load %arg6[%c0_70, %c0_71] : memref<8x128xf32, #tpu.memory_space<vmem>>, vector<8x128xf32>
    %cst_72 = arith.constant dense<0.000000e+00> : vector<8x512xf32>
    %159 = tpu.matmul %158, %5, %cst_72 {dimension_numbers = #tpu.dot_dimension_numbers<[1], [0], [0], [1], [0, 0, 1, 1], [], []>} : vector<8x128xf32>, vector<128x512xf32>, vector<8x512xf32> -> vector<8x512xf32>
    %c0_73 = arith.constant 0 : index
    %c3 = arith.constant 3 : index
    %c0_74 = arith.constant 0 : index
    %c0_75 = arith.constant 0 : index
    %160 = vector.load %arg3[%c0_73, %c3, %c0_74, %c0_75] : memref<1x8x8x512xf32, #tpu.memory_space<vmem>>, vector<1x1x8x512xf32>
    %161 = vector.shape_cast %160 : vector<1x1x8x512xf32> to vector<8x512xf32>
    %162 = arith.addf %159, %161 : vector<8x512xf32>
    %163 = vector.extract_strided_slice %162 {offsets = [0, 0], sizes = [8, 128], strides = [1, 1]} : vector<8x512xf32> to vector<8x128xf32>
    %164 = arith.negf %163 : vector<8x128xf32>
    %165 = math.exp %164 : vector<8x128xf32>
    %cst_76 = arith.constant 1.000000e+00 : f32
    %166 = vector.broadcast %cst_76 : f32 to vector<8x128xf32>
    %167 = arith.addf %166, %165 : vector<8x128xf32>
    %168 = arith.divf %166, %167 : vector<8x128xf32>
    %169 = vector.extract_strided_slice %162 {offsets = [0, 128], sizes = [8, 128], strides = [1, 1]} : vector<8x512xf32> to vector<8x128xf32>
    %170 = arith.negf %169 : vector<8x128xf32>
    %171 = math.exp %170 : vector<8x128xf32>
    %cst_77 = arith.constant 1.000000e+00 : f32
    %172 = vector.broadcast %cst_77 : f32 to vector<8x128xf32>
    %173 = arith.addf %172, %171 : vector<8x128xf32>
    %174 = arith.divf %172, %173 : vector<8x128xf32>
    %175 = vector.extract_strided_slice %162 {offsets = [0, 256], sizes = [8, 128], strides = [1, 1]} : vector<8x512xf32> to vector<8x128xf32>
    %176 = math.tanh %175 : vector<8x128xf32>
    %177 = vector.extract_strided_slice %162 {offsets = [0, 384], sizes = [8, 128], strides = [1, 1]} : vector<8x512xf32> to vector<8x128xf32>
    %178 = arith.negf %177 : vector<8x128xf32>
    %179 = math.exp %178 : vector<8x128xf32>
    %cst_78 = arith.constant 1.000000e+00 : f32
    %180 = vector.broadcast %cst_78 : f32 to vector<8x128xf32>
    %181 = arith.addf %180, %179 : vector<8x128xf32>
    %182 = arith.divf %180, %181 : vector<8x128xf32>
    %c0_79 = arith.constant 0 : index
    %c0_80 = arith.constant 0 : index
    %183 = vector.load %arg7[%c0_79, %c0_80] : memref<8x128xf32, #tpu.memory_space<vmem>>, vector<8x128xf32>
    %184 = arith.mulf %174, %183 : vector<8x128xf32>
    %185 = arith.mulf %168, %176 : vector<8x128xf32>
    %186 = arith.addf %184, %185 : vector<8x128xf32>
    %187 = math.tanh %186 : vector<8x128xf32>
    %188 = arith.mulf %182, %187 : vector<8x128xf32>
    %c0_81 = arith.constant 0 : index
    %c0_82 = arith.constant 0 : index
    %189 = vector.load %arg6[%c0_81, %c0_82] : memref<8x128xf32, #tpu.memory_space<vmem>>, vector<8x128xf32>
    %190 = vector.shape_cast %157 : vector<8x1xi1> to vector<8x1xi1>
    %191 = vector.broadcast %190 : vector<8x1xi1> to vector<8x128xi1>
    %192 = arith.select %191, %188, %189 : vector<8x128xi1>, vector<8x128xf32>
    %c0_83 = arith.constant 0 : index
    %c0_84 = arith.constant 0 : index
    %193 = vector.load %arg6[%c0_83, %c0_84] : memref<8x128xf32, #tpu.memory_space<vmem>>, vector<8x128xf32>
    tpu.vector_store %arg6[%c0_83, %c0_84], %192 {strides = array<i32>} : memref<8x128xf32, #tpu.memory_space<vmem>>, vector<8x128xf32>,
    %c0_85 = arith.constant 0 : index
    %c0_86 = arith.constant 0 : index
    %194 = vector.load %arg7[%c0_85, %c0_86] : memref<8x128xf32, #tpu.memory_space<vmem>>, vector<8x128xf32>
    %195 = vector.shape_cast %157 : vector<8x1xi1> to vector<8x1xi1>
    %196 = vector.broadcast %195 : vector<8x1xi1> to vector<8x128xi1>
    %197 = arith.select %196, %186, %194 : vector<8x128xi1>, vector<8x128xf32>
    %c0_87 = arith.constant 0 : index
    %c0_88 = arith.constant 0 : index
    %198 = vector.load %arg7[%c0_87, %c0_88] : memref<8x128xf32, #tpu.memory_space<vmem>>, vector<8x128xf32>
    tpu.vector_store %arg7[%c0_87, %c0_88], %197 {strides = array<i32>} : memref<8x128xf32, #tpu.memory_space<vmem>>, vector<8x128xf32>,
    %c4_i32 = arith.constant 4 : i32
    %199 = arith.addi %6, %c4_i32 : i32
    %c2_i32_89 = arith.constant 2 : i32
    %200 = arith.muli %c2_i32_89, %199 : i32
    %c7_i32_90 = arith.constant 7 : i32
    %201 = arith.subi %c7_i32_90, %200 : i32
    %202 = arith.muli %arg0, %201 : i32
    %203 = arith.addi %199, %202 : i32
    %204 = vector.broadcast %203 : i32 to vector<8x1xi32>
    %205 = arith.cmpi slt, %204, %3 : vector<8x1xi32>
    %c0_91 = arith.constant 0 : index
    %c0_92 = arith.constant 0 : index
    %206 = vector.load %arg6[%c0_91, %c0_92] : memref<8x128xf32, #tpu.memory_space<vmem>>, vector<8x128xf32>
    %cst_93 = arith.constant dense<0.000000e+00> : vector<8x512xf32>
    %207 = tpu.matmul %206, %5, %cst_93 {dimension_numbers = #tpu.dot_dimension_numbers<[1], [0], [0], [1], [0, 0, 1, 1], [], []>} : vector<8x128xf32>, vector<128x512xf32>, vector<8x512xf32> -> vector<8x512xf32>
    %c0_94 = arith.constant 0 : index
    %c4 = arith.constant 4 : index
    %c0_95 = arith.constant 0 : index
    %c0_96 = arith.constant 0 : index
    %208 = vector.load %arg3[%c0_94, %c4, %c0_95, %c0_96] : memref<1x8x8x512xf32, #tpu.memory_space<vmem>>, vector<1x1x8x512xf32>
    %209 = vector.shape_cast %208 : vector<1x1x8x512xf32> to vector<8x512xf32>
    %210 = arith.addf %207, %209 : vector<8x512xf32>
    %211 = vector.extract_strided_slice %210 {offsets = [0, 0], sizes = [8, 128], strides = [1, 1]} : vector<8x512xf32> to vector<8x128xf32>
    %212 = arith.negf %211 : vector<8x128xf32>
    %213 = math.exp %212 : vector<8x128xf32>
    %cst_97 = arith.constant 1.000000e+00 : f32
    %214 = vector.broadcast %cst_97 : f32 to vector<8x128xf32>
    %215 = arith.addf %214, %213 : vector<8x128xf32>
    %216 = arith.divf %214, %215 : vector<8x128xf32>
    %217 = vector.extract_strided_slice %210 {offsets = [0, 128], sizes = [8, 128], strides = [1, 1]} : vector<8x512xf32> to vector<8x128xf32>
    %218 = arith.negf %217 : vector<8x128xf32>
    %219 = math.exp %218 : vector<8x128xf32>
    %cst_98 = arith.constant 1.000000e+00 : f32
    %220 = vector.broadcast %cst_98 : f32 to vector<8x128xf32>
    %221 = arith.addf %220, %219 : vector<8x128xf32>
    %222 = arith.divf %220, %221 : vector<8x128xf32>
    %223 = vector.extract_strided_slice %210 {offsets = [0, 256], sizes = [8, 128], strides = [1, 1]} : vector<8x512xf32> to vector<8x128xf32>
    %224 = math.tanh %223 : vector<8x128xf32>
    %225 = vector.extract_strided_slice %210 {offsets = [0, 384], sizes = [8, 128], strides = [1, 1]} : vector<8x512xf32> to vector<8x128xf32>
    %226 = arith.negf %225 : vector<8x128xf32>
    %227 = math.exp %226 : vector<8x128xf32>
    %cst_99 = arith.constant 1.000000e+00 : f32
    %228 = vector.broadcast %cst_99 : f32 to vector<8x128xf32>
    %229 = arith.addf %228, %227 : vector<8x128xf32>
    %230 = arith.divf %228, %229 : vector<8x128xf32>
    %c0_100 = arith.constant 0 : index
    %c0_101 = arith.constant 0 : index
    %231 = vector.load %arg7[%c0_100, %c0_101] : memref<8x128xf32, #tpu.memory_space<vmem>>, vector<8x128xf32>
    %232 = arith.mulf %222, %231 : vector<8x128xf32>
    %233 = arith.mulf %216, %224 : vector<8x128xf32>
    %234 = arith.addf %232, %233 : vector<8x128xf32>
    %235 = math.tanh %234 : vector<8x128xf32>
    %236 = arith.mulf %230, %235 : vector<8x128xf32>
    %c0_102 = arith.constant 0 : index
    %c0_103 = arith.constant 0 : index
    %237 = vector.load %arg6[%c0_102, %c0_103] : memref<8x128xf32, #tpu.memory_space<vmem>>, vector<8x128xf32>
    %238 = vector.shape_cast %205 : vector<8x1xi1> to vector<8x1xi1>
    %239 = vector.broadcast %238 : vector<8x1xi1> to vector<8x128xi1>
    %240 = arith.select %239, %236, %237 : vector<8x128xi1>, vector<8x128xf32>
    %c0_104 = arith.constant 0 : index
    %c0_105 = arith.constant 0 : index
    %241 = vector.load %arg6[%c0_104, %c0_105] : memref<8x128xf32, #tpu.memory_space<vmem>>, vector<8x128xf32>
    tpu.vector_store %arg6[%c0_104, %c0_105], %240 {strides = array<i32>} : memref<8x128xf32, #tpu.memory_space<vmem>>, vector<8x128xf32>,
    %c0_106 = arith.constant 0 : index
    %c0_107 = arith.constant 0 : index
    %242 = vector.load %arg7[%c0_106, %c0_107] : memref<8x128xf32, #tpu.memory_space<vmem>>, vector<8x128xf32>
    %243 = vector.shape_cast %205 : vector<8x1xi1> to vector<8x1xi1>
    %244 = vector.broadcast %243 : vector<8x1xi1> to vector<8x128xi1>
    %245 = arith.select %244, %234, %242 : vector<8x128xi1>, vector<8x128xf32>
    %c0_108 = arith.constant 0 : index
    %c0_109 = arith.constant 0 : index
    %246 = vector.load %arg7[%c0_108, %c0_109] : memref<8x128xf32, #tpu.memory_space<vmem>>, vector<8x128xf32>
    tpu.vector_store %arg7[%c0_108, %c0_109], %245 {strides = array<i32>} : memref<8x128xf32, #tpu.memory_space<vmem>>, vector<8x128xf32>,
    %c5_i32 = arith.constant 5 : i32
    %247 = arith.addi %6, %c5_i32 : i32
    %c2_i32_110 = arith.constant 2 : i32
    %248 = arith.muli %c2_i32_110, %247 : i32
    %c7_i32_111 = arith.constant 7 : i32
    %249 = arith.subi %c7_i32_111, %248 : i32
    %250 = arith.muli %arg0, %249 : i32
    %251 = arith.addi %247, %250 : i32
    %252 = vector.broadcast %251 : i32 to vector<8x1xi32>
    %253 = arith.cmpi slt, %252, %3 : vector<8x1xi32>
    %c0_112 = arith.constant 0 : index
    %c0_113 = arith.constant 0 : index
    %254 = vector.load %arg6[%c0_112, %c0_113] : memref<8x128xf32, #tpu.memory_space<vmem>>, vector<8x128xf32>
    %cst_114 = arith.constant dense<0.000000e+00> : vector<8x512xf32>
    %255 = tpu.matmul %254, %5, %cst_114 {dimension_numbers = #tpu.dot_dimension_numbers<[1], [0], [0], [1], [0, 0, 1, 1], [], []>} : vector<8x128xf32>, vector<128x512xf32>, vector<8x512xf32> -> vector<8x512xf32>
    %c0_115 = arith.constant 0 : index
    %c5 = arith.constant 5 : index
    %c0_116 = arith.constant 0 : index
    %c0_117 = arith.constant 0 : index
    %256 = vector.load %arg3[%c0_115, %c5, %c0_116, %c0_117] : memref<1x8x8x512xf32, #tpu.memory_space<vmem>>, vector<1x1x8x512xf32>
    %257 = vector.shape_cast %256 : vector<1x1x8x512xf32> to vector<8x512xf32>
    %258 = arith.addf %255, %257 : vector<8x512xf32>
    %259 = vector.extract_strided_slice %258 {offsets = [0, 0], sizes = [8, 128], strides = [1, 1]} : vector<8x512xf32> to vector<8x128xf32>
    %260 = arith.negf %259 : vector<8x128xf32>
    %261 = math.exp %260 : vector<8x128xf32>
    %cst_118 = arith.constant 1.000000e+00 : f32
    %262 = vector.broadcast %cst_118 : f32 to vector<8x128xf32>
    %263 = arith.addf %262, %261 : vector<8x128xf32>
    %264 = arith.divf %262, %263 : vector<8x128xf32>
    %265 = vector.extract_strided_slice %258 {offsets = [0, 128], sizes = [8, 128], strides = [1, 1]} : vector<8x512xf32> to vector<8x128xf32>
    %266 = arith.negf %265 : vector<8x128xf32>
    %267 = math.exp %266 : vector<8x128xf32>
    %cst_119 = arith.constant 1.000000e+00 : f32
    %268 = vector.broadcast %cst_119 : f32 to vector<8x128xf32>
    %269 = arith.addf %268, %267 : vector<8x128xf32>
    %270 = arith.divf %268, %269 : vector<8x128xf32>
    %271 = vector.extract_strided_slice %258 {offsets = [0, 256], sizes = [8, 128], strides = [1, 1]} : vector<8x512xf32> to vector<8x128xf32>
    %272 = math.tanh %271 : vector<8x128xf32>
    %273 = vector.extract_strided_slice %258 {offsets = [0, 384], sizes = [8, 128], strides = [1, 1]} : vector<8x512xf32> to vector<8x128xf32>
    %274 = arith.negf %273 : vector<8x128xf32>
    %275 = math.exp %274 : vector<8x128xf32>
    %cst_120 = arith.constant 1.000000e+00 : f32
    %276 = vector.broadcast %cst_120 : f32 to vector<8x128xf32>
    %277 = arith.addf %276, %275 : vector<8x128xf32>
    %278 = arith.divf %276, %277 : vector<8x128xf32>
    %c0_121 = arith.constant 0 : index
    %c0_122 = arith.constant 0 : index
    %279 = vector.load %arg7[%c0_121, %c0_122] : memref<8x128xf32, #tpu.memory_space<vmem>>, vector<8x128xf32>
    %280 = arith.mulf %270, %279 : vector<8x128xf32>
    %281 = arith.mulf %264, %272 : vector<8x128xf32>
    %282 = arith.addf %280, %281 : vector<8x128xf32>
    %283 = math.tanh %282 : vector<8x128xf32>
    %284 = arith.mulf %278, %283 : vector<8x128xf32>
    %c0_123 = arith.constant 0 : index
    %c0_124 = arith.constant 0 : index
    %285 = vector.load %arg6[%c0_123, %c0_124] : memref<8x128xf32, #tpu.memory_space<vmem>>, vector<8x128xf32>
    %286 = vector.shape_cast %253 : vector<8x1xi1> to vector<8x1xi1>
    %287 = vector.broadcast %286 : vector<8x1xi1> to vector<8x128xi1>
    %288 = arith.select %287, %284, %285 : vector<8x128xi1>, vector<8x128xf32>
    %c0_125 = arith.constant 0 : index
    %c0_126 = arith.constant 0 : index
    %289 = vector.load %arg6[%c0_125, %c0_126] : memref<8x128xf32, #tpu.memory_space<vmem>>, vector<8x128xf32>
    tpu.vector_store %arg6[%c0_125, %c0_126], %288 {strides = array<i32>} : memref<8x128xf32, #tpu.memory_space<vmem>>, vector<8x128xf32>,
    %c0_127 = arith.constant 0 : index
    %c0_128 = arith.constant 0 : index
    %290 = vector.load %arg7[%c0_127, %c0_128] : memref<8x128xf32, #tpu.memory_space<vmem>>, vector<8x128xf32>
    %291 = vector.shape_cast %253 : vector<8x1xi1> to vector<8x1xi1>
    %292 = vector.broadcast %291 : vector<8x1xi1> to vector<8x128xi1>
    %293 = arith.select %292, %282, %290 : vector<8x128xi1>, vector<8x128xf32>
    %c0_129 = arith.constant 0 : index
    %c0_130 = arith.constant 0 : index
    %294 = vector.load %arg7[%c0_129, %c0_130] : memref<8x128xf32, #tpu.memory_space<vmem>>, vector<8x128xf32>
    tpu.vector_store %arg7[%c0_129, %c0_130], %293 {strides = array<i32>} : memref<8x128xf32, #tpu.memory_space<vmem>>, vector<8x128xf32>,
    %c6_i32 = arith.constant 6 : i32
    %295 = arith.addi %6, %c6_i32 : i32
    %c2_i32_131 = arith.constant 2 : i32
    %296 = arith.muli %c2_i32_131, %295 : i32
    %c7_i32_132 = arith.constant 7 : i32
    %297 = arith.subi %c7_i32_132, %296 : i32
    %298 = arith.muli %arg0, %297 : i32
    %299 = arith.addi %295, %298 : i32
    %300 = vector.broadcast %299 : i32 to vector<8x1xi32>
    %301 = arith.cmpi slt, %300, %3 : vector<8x1xi32>
    %c0_133 = arith.constant 0 : index
    %c0_134 = arith.constant 0 : index
    %302 = vector.load %arg6[%c0_133, %c0_134] : memref<8x128xf32, #tpu.memory_space<vmem>>, vector<8x128xf32>
    %cst_135 = arith.constant dense<0.000000e+00> : vector<8x512xf32>
    %303 = tpu.matmul %302, %5, %cst_135 {dimension_numbers = #tpu.dot_dimension_numbers<[1], [0], [0], [1], [0, 0, 1, 1], [], []>} : vector<8x128xf32>, vector<128x512xf32>, vector<8x512xf32> -> vector<8x512xf32>
    %c0_136 = arith.constant 0 : index
    %c6 = arith.constant 6 : index
    %c0_137 = arith.constant 0 : index
    %c0_138 = arith.constant 0 : index
    %304 = vector.load %arg3[%c0_136, %c6, %c0_137, %c0_138] : memref<1x8x8x512xf32, #tpu.memory_space<vmem>>, vector<1x1x8x512xf32>
    %305 = vector.shape_cast %304 : vector<1x1x8x512xf32> to vector<8x512xf32>
    %306 = arith.addf %303, %305 : vector<8x512xf32>
    %307 = vector.extract_strided_slice %306 {offsets = [0, 0], sizes = [8, 128], strides = [1, 1]} : vector<8x512xf32> to vector<8x128xf32>
    %308 = arith.negf %307 : vector<8x128xf32>
    %309 = math.exp %308 : vector<8x128xf32>
    %cst_139 = arith.constant 1.000000e+00 : f32
    %310 = vector.broadcast %cst_139 : f32 to vector<8x128xf32>
    %311 = arith.addf %310, %309 : vector<8x128xf32>
    %312 = arith.divf %310, %311 : vector<8x128xf32>
    %313 = vector.extract_strided_slice %306 {offsets = [0, 128], sizes = [8, 128], strides = [1, 1]} : vector<8x512xf32> to vector<8x128xf32>
    %314 = arith.negf %313 : vector<8x128xf32>
    %315 = math.exp %314 : vector<8x128xf32>
    %cst_140 = arith.constant 1.000000e+00 : f32
    %316 = vector.broadcast %cst_140 : f32 to vector<8x128xf32>
    %317 = arith.addf %316, %315 : vector<8x128xf32>
    %318 = arith.divf %316, %317 : vector<8x128xf32>
    %319 = vector.extract_strided_slice %306 {offsets = [0, 256], sizes = [8, 128], strides = [1, 1]} : vector<8x512xf32> to vector<8x128xf32>
    %320 = math.tanh %319 : vector<8x128xf32>
    %321 = vector.extract_strided_slice %306 {offsets = [0, 384], sizes = [8, 128], strides = [1, 1]} : vector<8x512xf32> to vector<8x128xf32>
    %322 = arith.negf %321 : vector<8x128xf32>
    %323 = math.exp %322 : vector<8x128xf32>
    %cst_141 = arith.constant 1.000000e+00 : f32
    %324 = vector.broadcast %cst_141 : f32 to vector<8x128xf32>
    %325 = arith.addf %324, %323 : vector<8x128xf32>
    %326 = arith.divf %324, %325 : vector<8x128xf32>
    %c0_142 = arith.constant 0 : index
    %c0_143 = arith.constant 0 : index
    %327 = vector.load %arg7[%c0_142, %c0_143] : memref<8x128xf32, #tpu.memory_space<vmem>>, vector<8x128xf32>
    %328 = arith.mulf %318, %327 : vector<8x128xf32>
    %329 = arith.mulf %312, %320 : vector<8x128xf32>
    %330 = arith.addf %328, %329 : vector<8x128xf32>
    %331 = math.tanh %330 : vector<8x128xf32>
    %332 = arith.mulf %326, %331 : vector<8x128xf32>
    %c0_144 = arith.constant 0 : index
    %c0_145 = arith.constant 0 : index
    %333 = vector.load %arg6[%c0_144, %c0_145] : memref<8x128xf32, #tpu.memory_space<vmem>>, vector<8x128xf32>
    %334 = vector.shape_cast %301 : vector<8x1xi1> to vector<8x1xi1>
    %335 = vector.broadcast %334 : vector<8x1xi1> to vector<8x128xi1>
    %336 = arith.select %335, %332, %333 : vector<8x128xi1>, vector<8x128xf32>
    %c0_146 = arith.constant 0 : index
    %c0_147 = arith.constant 0 : index
    %337 = vector.load %arg6[%c0_146, %c0_147] : memref<8x128xf32, #tpu.memory_space<vmem>>, vector<8x128xf32>
    tpu.vector_store %arg6[%c0_146, %c0_147], %336 {strides = array<i32>} : memref<8x128xf32, #tpu.memory_space<vmem>>, vector<8x128xf32>,
    %c0_148 = arith.constant 0 : index
    %c0_149 = arith.constant 0 : index
    %338 = vector.load %arg7[%c0_148, %c0_149] : memref<8x128xf32, #tpu.memory_space<vmem>>, vector<8x128xf32>
    %339 = vector.shape_cast %301 : vector<8x1xi1> to vector<8x1xi1>
    %340 = vector.broadcast %339 : vector<8x1xi1> to vector<8x128xi1>
    %341 = arith.select %340, %330, %338 : vector<8x128xi1>, vector<8x128xf32>
    %c0_150 = arith.constant 0 : index
    %c0_151 = arith.constant 0 : index
    %342 = vector.load %arg7[%c0_150, %c0_151] : memref<8x128xf32, #tpu.memory_space<vmem>>, vector<8x128xf32>
    tpu.vector_store %arg7[%c0_150, %c0_151], %341 {strides = array<i32>} : memref<8x128xf32, #tpu.memory_space<vmem>>, vector<8x128xf32>,
    %c7_i32_152 = arith.constant 7 : i32
    %343 = arith.addi %6, %c7_i32_152 : i32
    %c2_i32_153 = arith.constant 2 : i32
    %344 = arith.muli %c2_i32_153, %343 : i32
    %c7_i32_154 = arith.constant 7 : i32
    %345 = arith.subi %c7_i32_154, %344 : i32
    %346 = arith.muli %arg0, %345 : i32
    %347 = arith.addi %343, %346 : i32
    %348 = vector.broadcast %347 : i32 to vector<8x1xi32>
    %349 = arith.cmpi slt, %348, %3 : vector<8x1xi32>
    %c0_155 = arith.constant 0 : index
    %c0_156 = arith.constant 0 : index
    %350 = vector.load %arg6[%c0_155, %c0_156] : memref<8x128xf32, #tpu.memory_space<vmem>>, vector<8x128xf32>
    %cst_157 = arith.constant dense<0.000000e+00> : vector<8x512xf32>
    %351 = tpu.matmul %350, %5, %cst_157 {dimension_numbers = #tpu.dot_dimension_numbers<[1], [0], [0], [1], [0, 0, 1, 1], [], []>} : vector<8x128xf32>, vector<128x512xf32>, vector<8x512xf32> -> vector<8x512xf32>
    %c0_158 = arith.constant 0 : index
    %c7 = arith.constant 7 : index
    %c0_159 = arith.constant 0 : index
    %c0_160 = arith.constant 0 : index
    %352 = vector.load %arg3[%c0_158, %c7, %c0_159, %c0_160] : memref<1x8x8x512xf32, #tpu.memory_space<vmem>>, vector<1x1x8x512xf32>
    %353 = vector.shape_cast %352 : vector<1x1x8x512xf32> to vector<8x512xf32>
    %354 = arith.addf %351, %353 : vector<8x512xf32>
    %355 = vector.extract_strided_slice %354 {offsets = [0, 0], sizes = [8, 128], strides = [1, 1]} : vector<8x512xf32> to vector<8x128xf32>
    %356 = arith.negf %355 : vector<8x128xf32>
    %357 = math.exp %356 : vector<8x128xf32>
    %cst_161 = arith.constant 1.000000e+00 : f32
    %358 = vector.broadcast %cst_161 : f32 to vector<8x128xf32>
    %359 = arith.addf %358, %357 : vector<8x128xf32>
    %360 = arith.divf %358, %359 : vector<8x128xf32>
    %361 = vector.extract_strided_slice %354 {offsets = [0, 128], sizes = [8, 128], strides = [1, 1]} : vector<8x512xf32> to vector<8x128xf32>
    %362 = arith.negf %361 : vector<8x128xf32>
    %363 = math.exp %362 : vector<8x128xf32>
    %cst_162 = arith.constant 1.000000e+00 : f32
    %364 = vector.broadcast %cst_162 : f32 to vector<8x128xf32>
    %365 = arith.addf %364, %363 : vector<8x128xf32>
    %366 = arith.divf %364, %365 : vector<8x128xf32>
    %367 = vector.extract_strided_slice %354 {offsets = [0, 256], sizes = [8, 128], strides = [1, 1]} : vector<8x512xf32> to vector<8x128xf32>
    %368 = math.tanh %367 : vector<8x128xf32>
    %369 = vector.extract_strided_slice %354 {offsets = [0, 384], sizes = [8, 128], strides = [1, 1]} : vector<8x512xf32> to vector<8x128xf32>
    %370 = arith.negf %369 : vector<8x128xf32>
    %371 = math.exp %370 : vector<8x128xf32>
    %cst_163 = arith.constant 1.000000e+00 : f32
    %372 = vector.broadcast %cst_163 : f32 to vector<8x128xf32>
    %373 = arith.addf %372, %371 : vector<8x128xf32>
    %374 = arith.divf %372, %373 : vector<8x128xf32>
    %c0_164 = arith.constant 0 : index
    %c0_165 = arith.constant 0 : index
    %375 = vector.load %arg7[%c0_164, %c0_165] : memref<8x128xf32, #tpu.memory_space<vmem>>, vector<8x128xf32>
    %376 = arith.mulf %366, %375 : vector<8x128xf32>
    %377 = arith.mulf %360, %368 : vector<8x128xf32>
    %378 = arith.addf %376, %377 : vector<8x128xf32>
    %379 = math.tanh %378 : vector<8x128xf32>
    %380 = arith.mulf %374, %379 : vector<8x128xf32>
    %c0_166 = arith.constant 0 : index
    %c0_167 = arith.constant 0 : index
    %381 = vector.load %arg6[%c0_166, %c0_167] : memref<8x128xf32, #tpu.memory_space<vmem>>, vector<8x128xf32>
    %382 = vector.shape_cast %349 : vector<8x1xi1> to vector<8x1xi1>
    %383 = vector.broadcast %382 : vector<8x1xi1> to vector<8x128xi1>
    %384 = arith.select %383, %380, %381 : vector<8x128xi1>, vector<8x128xf32>
    %c0_168 = arith.constant 0 : index
    %c0_169 = arith.constant 0 : index
    %385 = vector.load %arg6[%c0_168, %c0_169] : memref<8x128xf32, #tpu.memory_space<vmem>>, vector<8x128xf32>
    tpu.vector_store %arg6[%c0_168, %c0_169], %384 {strides = array<i32>} : memref<8x128xf32, #tpu.memory_space<vmem>>, vector<8x128xf32>,
    %c0_170 = arith.constant 0 : index
    %c0_171 = arith.constant 0 : index
    %386 = vector.load %arg7[%c0_170, %c0_171] : memref<8x128xf32, #tpu.memory_space<vmem>>, vector<8x128xf32>
    %387 = vector.shape_cast %349 : vector<8x1xi1> to vector<8x1xi1>
    %388 = vector.broadcast %387 : vector<8x1xi1> to vector<8x128xi1>
    %389 = arith.select %388, %378, %386 : vector<8x128xi1>, vector<8x128xf32>
    %c0_172 = arith.constant 0 : index
    %c0_173 = arith.constant 0 : index
    %390 = vector.load %arg7[%c0_172, %c0_173] : memref<8x128xf32, #tpu.memory_space<vmem>>, vector<8x128xf32>
    tpu.vector_store %arg7[%c0_172, %c0_173], %389 {strides = array<i32>} : memref<8x128xf32, #tpu.memory_space<vmem>>, vector<8x128xf32>,
    %c0_i32_174 = arith.constant 0 : i32
    %391 = arith.cmpi eq, %arg1, %c0_i32_174 : i32
    %392 = arith.extui %391 : i1 to i32
    %c0_i32_175 = arith.constant 0 : i32
    %393 = arith.cmpi ne, %392, %c0_i32_175 : i32
    scf.if %393 {
      %c0_176 = arith.constant 0 : index
      %c0_177 = arith.constant 0 : index
      %394 = vector.load %arg6[%c0_176, %c0_177] : memref<8x128xf32, #tpu.memory_space<vmem>>, vector<8x128xf32>
      %c0_178 = arith.constant 0 : index
      %c0_179 = arith.constant 0 : index
      %c0_180 = arith.constant 0 : index
      %395 = vector.load %arg5[%c0_178, %c0_179, %c0_180] : memref<1x8x128xf32, #tpu.memory_space<vmem>>, vector<1x8x128xf32>
      %396 = vector.shape_cast %395 : vector<1x8x128xf32> to vector<8x128xf32>
      %397 = vector.shape_cast %394 : vector<8x128xf32> to vector<1x8x128xf32>
      tpu.vector_store %arg5[%c0_178, %c0_179, %c0_180], %397 {strides = array<i32>} : memref<1x8x128xf32, #tpu.memory_space<vmem>>, vector<1x8x128xf32>,
    } else {
    }
    return
  }
  func.func @transform_0(%arg0: i32, %arg1: i32) -> (i32, i32) {
    %c0_i32 = arith.constant 0 : i32
    %c0_i32_0 = arith.constant 0 : i32
    %c0_i32_1 = arith.constant 0 : i32
    return %c0_i32, %c0_i32_0 : i32, i32
  }
  func.func @transform_1(%arg0: i32, %arg1: i32) -> (i32, i32, i32, i32) {
    %c0_i32 = arith.constant 0 : i32
    %c0_i32_0 = arith.constant 0 : i32
    %c0_i32_1 = arith.constant 0 : i32
    return %arg0, %arg1, %c0_i32, %c0_i32_0 : i32, i32, i32, i32
  }
  func.func @transform_2(%arg0: i32, %arg1: i32) -> (i32, i32, i32) {
    %c0_i32 = arith.constant 0 : i32
    %c0_i32_0 = arith.constant 0 : i32
    %c0_i32_1 = arith.constant 0 : i32
    return %arg0, %c0_i32, %c0_i32_0 : i32, i32, i32
  }
  func.func @transform_3(%arg0: i32, %arg1: i32) -> (i32, i32, i32) {
    %c0_i32 = arith.constant 0 : i32
    %c0_i32_0 = arith.constant 0 : i32
    %c0_i32_1 = arith.constant 0 : i32
    return %arg0, %c0_i32, %c0_i32_0 : i32, i32, i32
  }
}

</mosaic_0001>

<bundles_post_ra>
// kernel: tpu_custom_call.1
= control target key start
LH: loop header
LB: loop body
LE: loop exit
PB: predicated region body
PF: predicated region fallthrough
CT: control target
= control target key end

     0   :  { %8 = vsyncpa [#allocation5], 0  ;;  %s3679_s0 = inlined_call_operand.vmem [shape: s32[8,1], index: 0, kind: input, shape index: {}]   ;;  %s3680_s1 = inlined_call_operand.hbm [shape: f32[2,8,8,512], index: 1, kind: input, shape index: {}]   ;;  %s3681_s2 = inlined_call_operand.hbm [shape: f32[2,128,512], index: 2, kind: input, shape index: {}]   ;;  %s3682_s3 = inlined_call_operand.hbm [shape: f32[2,8,128], index: 3, kind: output, shape index: {}]  }
   0x1   :  { %10 = vsyncpa [#allocation5 + $0x1], 0 }
   0x2   :  { %11 = vsyncpa [#allocation8], 0 }
   0x3   :  { %13 = vsyncpa [#allocation8 + $0x1], 0 }
   0x4   :  { %14 = vsyncpa [#allocation6], 0 }
   0x5   :  { %16 = vsyncpa [#allocation6 + $0x1], 0  ;;  %s2922_s12 = smov 0   ;;  %s2924_s13 = smov 0  }
   0x6   :  { %s2926_s14 = smov 0   ;;  %s2928_s15 = smov 0  }
   0x7   :  { %s2930_s16 = smov 0   ;;  %s2932_s17 = smov 0  }
   0x8 LB: > { %s1960_s18 = sadd.s32 4294967295, %s2893_s17   ;;  %s1961_s19 = sadd.s32 4294967294, %s2893_s17   ;;  %s2893_s17 = sphi %s2932_s17, %s22_s17   ;;  %s2889_s16 = sphi %s2930_s16, %s3700_s16   ;;  %s2885_s15 = sphi %s2928_s15, %s3699_s15   ;;  %s2881_s14 = sphi %s2926_s14, %s3698_s14   ;;  %s2877_s13 = sphi %s2924_s13, %s3697_s13   ;;  %s2873_s12 = sphi %s2922_s12, %s3696_s12  }
   0x9   : > { %s34_s20 = sadd.s32 1, %s2889_s16  ;;  %s64_s21 = sadd.s32 1, %s2881_s14 }
   0xa   : > { %p36_p0 = scmp.ge.s32.totalorder %s34_s20, 2  ;;  %p71_p1 = scmp.ne.s32.totalorder %s2881_s14, %s2877_s13 }
   0xb   : > { %p72_p2 = scmp.eq.s32.totalorder %s2893_s17, 0  ;;  %p77_p3 = scmp.ne.s32.totalorder %s2877_s13, %s2873_s12 }
   0xc   : > { %s3702_s20 = smov (%p36_p0, %s34_s20), 0  ;;  %p78_p5 = scmp.eq.s32.totalorder %s1960_s18, 0 }
   0xd   : > { %p2963_p4 = por %p72_p2, %p71_p1  ;;  %s59_s23 = ssub.s32 %s2889_s16, %s3702_s20 }
   0xe   : > { %p127_p6 = scmp.eq.s32.totalorder %s1960_s18, 1  ;;  %p62_p7 = scmp.eq.s32.totalorder %s59_s23, 0 }
   0xf   : > { %p2969_p8 = por %p78_p5, %p77_p3  ;;  %p133_p10 = scmp.eq.s32.totalorder %s1961_s19, 1 }
  0x10   : > { %p2973_p9 = por %p127_p6, %p71_p1  ;;  %p2563_p13 = scmp.lt.s32.totalorder %s2893_s17, 2 }
  0x11   : > { %s3686_s24 = scalar_select %p2969_p8, 1, 0 }
  0x12   : > { %s3687_s25 = scalar_select %p2973_p9, 1, 0 }
  0x13   : > { %s2978_s26 = scalar_select %p62_p7, %s2881_s14, %s64_s21  }
  0x14   : > { %p2980_p11 = por %p133_p10, %p77_p3  ;;  %s2987_s28 = sand.u32 1, %s2881_s14  }
  0x15   : > { %s1964_s29 = sshll.u32 %s2987_s28, 8  ;;  %s2030_s30 = sshll.u32 %s2889_s16, 12 }
  0x16   : > { %s3688_s27 = scalar_select %p2980_p11, 1, 0 }
  0x17   : > { %s2994_s6 = scalar_lea.hbm %s3680_s1, %s2030_s30  ;;  %s160_s7 = scalar_lea.vmem [#allocation4], %s1964_s29 }
  0x18   : > { %s170_s8 = sshll.u32 %s160_s7, 4  ;;  %p3000_p0 = pnand %p2563_p13, %p2963_p4  ;;  %s2996_s8 = int_to_ptr.vmem [resolvable:$true] %s170_s8 }
  0x19   : > { %s157_s10 = scalar_lea.sflag [#allocation5], %s2987_s28  ;;  %s2747_s11 = scalar_lea.hbm %s2994_s6, 4096 }
  0x1a   : > { %p2748_p2 = scmp.ne.s32.totalorder %s2994_s6, %s2747_s11  ;;  %p2749_p3 = pneg %p3000_p0 }
  0x1b   : > { %s2752_s21 = scalar_lea.hbm %s3680_s1, 8192  ;;  %p2753_p4 = scmp.lt.u32.totalorder %s2994_s6, %s3680_s1 }
  0x1c   : > { %p2750_p5 = pnand %p2749_p3, %p2748_p2  ;;  %p2754_p7 = scmp.lt.u32.totalorder %s2752_s21, %s2747_s11 }
  0x1d   : > { %p2756_p13 = scmp.lt.u32.totalorder %s2747_s11, %s2994_s6 }
  0x1e   : > { %p2751_p6 = pneg %p2750_p5  ;;  %p2755_p10 = por %p2754_p7, %p2753_p4 }
  0x20   : > { %p2757_p12 = por %p2756_p13, %p2755_p10 }
  0x22   : > { %p2758_p1 = pnand %p2757_p12, %p2751_p6 }
  0x24   : > { %2761 = shalt.err (!%p2758_p1)
}
  0x25   : > { %s2762_s29 = scalar_lea.vmem %s2996_s8, 4096  ;;  %s2895_s30 = smov [#allocation4]  }
  0x26   : > { %p2763_p2 = scmp.ne.s32.totalorder %s2996_s8, %s2762_s29  ;;  %s2767_s4 = sshll.u32 %s2895_s30, 4  ;;  %s2768_s4 = int_to_ptr.vmem [resolvable:$false] %s2767_s4 }
  0x27   : > { %s2769_s5 = scalar_lea.vmem %s2768_s4, 8192  ;;  %p2770_p9 = scmp.lt.s32.totalorder %s2996_s8, %s2768_s4 }
  0x28   : > { %p2765_p5 = pnand %p2763_p2, %p2749_p3  ;;  %p2771_p4 = scmp.lt.s32.totalorder %s2769_s5, %s2762_s29 }
  0x2a   : > { %p2766_p11 = pneg %p2765_p5  ;;  %p2772_p7 = por %p2771_p4, %p2770_p9 }
  0x2c   : > { %p2773_p10 = pnand %p2772_p7, %p2766_p11 }
  0x2e   : > { %2776 = shalt.err (!%p2773_p10)
}
  0x2f   : > { %s2896_s7 = smov 512   ;;  %s2897_s11 = smov 32  }
  0x30   : > { %2555 = dma.hbm_to_vmem [thread:$0]  (!%p3000_p0), %s2994_s6, 4096, %s2996_s8, %s157_s10, %s2896_s7, %s2896_s7, %s2897_s11  }
  0x31   : > { %p199_p9 = scmp.lt.s32.totalorder %s2893_s17, 3  ;;  %s1967_s18 = sshll.u32 %s2987_s28, 9 }
  0x32   : > { %s2031_s19 = sshll.u32 %s2889_s16, 13  ;;  %p3690_p11 = scmp.ge.s32.totalorder %s2893_s17, 1 }
  0x33   : > { %s3048_s29 = scalar_lea.hbm %s3681_s2, %s2031_s19  ;;  %s184_s30 = scalar_lea.vmem [#allocation7], %s1967_s18 }
  0x34   : > { %p3041_p12 = pnand %p3690_p11, %p199_p9  ;;  %s191_s4 = sshll.u32 %s184_s30, 4  ;;  %s3050_s4 = int_to_ptr.vmem [resolvable:$true] %s191_s4 }
  0x35   : > { %s181_s6 = scalar_lea.sflag [#allocation8], %s2987_s28  ;;  %s2777_s8 = scalar_lea.hbm %s3048_s29, 8192 }
  0x36   : > { %p2778_p1 = scmp.ne.s32.totalorder %s3048_s29, %s2777_s8  ;;  %s2782_s19 = scalar_lea.hbm %s3681_s2, 16384 }
  0x37   : > { %p2783_p2 = scmp.lt.u32.totalorder %s3048_s29, %s3681_s2  ;;  %p2784_p5 = scmp.lt.u32.totalorder %s2782_s19, %s2777_s8 }
  0x38   : > { %p2780_p6 = pnand %p2778_p1, %p2749_p3  ;;  %p2786_p7 = scmp.lt.u32.totalorder %s2777_s8, %s3048_s29 }
  0x39   : > { %p2785_p4 = por %p2784_p5, %p2783_p2 }
  0x3a   : > { %p2781_p13 = pneg %p2780_p6 }
  0x3b   : > { %p2787_p10 = por %p2786_p7, %p2785_p4 }
  0x3d   : > { %p2788_p9 = pnand %p2787_p10, %p2781_p13 }
  0x3f   : > { %2791 = shalt.err (!%p2788_p9)
}
  0x40   : > { %s2792_s18 = scalar_lea.vmem %s3050_s4, 8192  ;;  %s2898_s30 = smov [#allocation7]  }
  0x41   : > { %p2793_p11 = scmp.ne.s32.totalorder %s3050_s4, %s2792_s18  ;;  %s2797_s10 = sshll.u32 %s2898_s30, 4  ;;  %s2798_s10 = int_to_ptr.vmem [resolvable:$false] %s2797_s10 }
  0x42   : > { %s2799_s5 = scalar_lea.vmem %s2798_s10, 16384  ;;  %p2800_p8 = scmp.lt.s32.totalorder %s3050_s4, %s2798_s10 }
  0x43   : > { %p2795_p1 = pnand %p2793_p11, %p2749_p3  ;;  %p2801_p2 = scmp.lt.s32.totalorder %s2799_s5, %s2792_s18 }
  0x45   : > { %p2796_p6 = pneg %p2795_p1  ;;  %p2802_p5 = por %p2801_p2, %p2800_p8 }
  0x47   : > { %p2803_p4 = pnand %p2802_p5, %p2796_p6 }
  0x49   : > { %2806 = shalt.err (!%p2803_p4)
}
  0x4a   : > { %2558 = dma.hbm_to_vmem [thread:$0]  (!%p3000_p0), %s3048_s29, 8192, %s3050_s4, %s181_s6, %s2896_s7, %s2896_s7, %s2897_s11  }
  0x4b   : > { %203 = sbr.rel (%p3041_p12) target bundleno = 2207 (0x89f), region = 32  ;;  %s3084_s8 = sand.u32 (!%p3041_p12), 1, %s2877_s13  }
  0x4c   : > { %s1971_s19 = sshll.u32 (!%p3041_p12), %s3084_s8, 8  ;;  %s206_s22 = scalar_lea.sflag (!%p3041_p12), [#allocation5], %s3084_s8 }
  0x4d   : > { %s3088_s9 = scalar_lea.vmem (!%p3041_p12), [#allocation4], %s1971_s19  ;;  %p3692_p8 = scmp.ne.s32.totalorder (!%p3041_p12), %s3686_s24, 0 }
  0x52   : > { %2860 = dma.done.wait (%p3692_p8), %s206_s22, 4096  }
  0x53   : > { %2862 = vsyncadd (%p3692_p8), %s206_s22, 4294963200  ;;  %s1972_s28 = sshll.u32 %s3084_s8, 9  ;;  %s215_s7 = scalar_lea.sflag [#allocation8], %s3084_s8 }
  0x54   : > { %s3096_s11 = scalar_lea.vmem [#allocation7], %s1972_s28 }
  0x55   : > { %2864 = dma.done.wait (%p3692_p8), %s215_s7, 8192  }
  0x56   : > { %2866 = vsyncadd (%p3692_p8), %s215_s7, 4294959104  ;;  %v2899_v0 = vmov 0.0   ;;  %v2900_v1 = vmov 0   ;;  %v255_v2 = vld [vmem:[%s3096_s11 + $0x8] sm:$0xff]  ;;  %v254_v4 = vld [vmem:[%s3096_s11] sm:$0xff]  ;;  %s510_s24 = smul.u32 5, %s2885_s15 }
  0x57   : > { %394 = vmatprep.mubr.f32.mxu0 %v2899_v0  ;;  %465 = vmatprep.mubr.f32.mxu1 %v2899_v0  ;;  %v259_v3 = vld [vmem:[%s3096_s11 + $0x28] sm:$0xff]  ;;  %v258_v6 = vld [vmem:[%s3096_s11 + $0x20] sm:$0xff]  ;;  %v257_v20 = vld [vmem:[%s3096_s11 + $0x18] sm:$0xff]  ;;  %s321_s21 = smul.u32 7, %s2885_s15  ;;  %s891_s19 = sadd.s32 3, %s2885_s15 }
  0x58   : > { %2617 = vset.pattern.permute.xlu0 %v2900_v1  ;;  %2618 = vset.pattern.permute.xlu1 %v2900_v1  ;;  %v3109_v5 = vpack.c.bf16 %v259_v3, %v255_v2  ;;  %v263_v7 = vld [vmem:[%s3096_s11 + $0x48] sm:$0xff]  ;;  %v3114_v9 = vpack.c.bf16 %v258_v6, %v254_v4  ;;  %v262_v11 = vld [vmem:[%s3096_s11 + $0x40] sm:$0xff]  ;;  %v261_v21 = vld [vmem:[%s3096_s11 + $0x38] sm:$0xff]  ;;  %s3195_s29 = sadd.s32 1, %s510_s24  ;;  %s1080_s4 = smul.u32 4294967295, %s2885_s15 }
  0x59   : > { %v267_v8 = vld [vmem:[%s3096_s11 + $0x68] sm:$0xff]  ;;  %v266_v12 = vld [vmem:[%s3096_s11 + $0x60] sm:$0xff]  ;;  %v3135_v23 = vpack.c.bf16 %v261_v21, %v257_v20  ;;  %v256_v24 = vld [vmem:[%s3096_s11 + $0x10] sm:$0xff]  ;;  %s1460_s23 = smul.u32 4294967291, %s2885_s15  ;;  %s1843_s30 = scalar_lea.sflag [#allocation6], %s3084_s8 }
  0x5a   : > { %v3116_v10 = vpack.c.bf16 %v267_v8, %v263_v7  ;;  %v271_v13 = vld [vmem:[%s3096_s11 + $0x88] sm:$0xff]  ;;  %2035 = vmatprep.subr.bf16.mxu0 %v3109_v5  ;;  %v3124_v15 = vpack.c.bf16 %v266_v12, %v262_v11  ;;  %v270_v16 = vld [vmem:[%s3096_s11 + $0x80] sm:$0xff]  ;;  %v260_v25 = vld [vmem:[%s3096_s11 + $0x30] sm:$0xff]  ;;  %v323_v11 = vstv %s321_s21  ;;  %s3220_s6 = sadd.s32 4, %s1080_s4  ;;  %s700_s5 = smul.u32 3, %s2885_s15 }
  0x5b   : > { %v275_v14 = vld [vmem:[%s3096_s11 + $0xa8] sm:$0xff]  ;;  %2037 = vmatpush1.bf16.msra.mxu0 %v3114_v9  ;;  %v274_v17 = vld [vmem:[%s3096_s11 + $0xa0] sm:$0xff]  ;;  %v3139_v26 = vpack.c.bf16 %v260_v25, %v256_v24  ;;  %2067 = vmatprep.subr.bf16.mxu1 %v3135_v23  ;;  %v265_v28 = vld [vmem:[%s3096_s11 + $0x58] sm:$0xff]  ;;  %v512_v12 = vstv %s3195_s29  ;;  %s1461_s10 = sadd.s32 6, %s1460_s23  ;;  %s1270_s22 = smul.u32 4294967293, %s2885_s15 }
  0x5c   : > { %2039 = vmatprep.subr.bf16.mxu0 %v3116_v10  ;;  %v3129_v18 = vpack.c.bf16 %v275_v14, %v271_v13  ;;  %v279_v19 = vld [vmem:[%s3096_s11 + $0xc8] sm:$0xff]  ;;  %v3142_v27 = vpack.c.bf16 %v274_v17, %v270_v16  ;;  %v269_v29 = vld [vmem:[%s3096_s11 + $0x78] sm:$0xff]  ;;  %v264_v30 = vld [vmem:[%s3096_s11 + $0x50] sm:$0xff]  ;;  %s701_s28 = sadd.s32 2, %s700_s5  ;;  %s1650_s7 = smul.u32 4294967289, %s2885_s15 }
  0x5d   : > { %v283_v22 = vld [vmem:[%s3096_s11 + $0xe8] sm:$0xff]  ;;  %v278_v32 = vld [vmem:[%s3096_s11 + $0xc0] sm:$0xff]  ;;  %2069 = vmatpush1.bf16.msra.mxu1 %v3139_v26  ;;  %v3154_v34 = vpack.c.bf16 %v269_v29, %v265_v28  ;;  %v268_v35 = vld [vmem:[%s3096_s11 + $0x70] sm:$0xff]  ;;  %s2027_s21 = sshll.u32 %s2885_s15, 7  ;;  %p3693_p3 = scmp.ne.s32.totalorder %s3687_s25, 0 }
  0x5e   : > { %v3149_v31 = vpack.c.bf16 %v283_v22, %v279_v19  ;;  %v282_v33 = vld [vmem:[%s3096_s11 + $0xe0] sm:$0xff]  ;;  %v287_v36 = vld [vmem:[%s3096_s11 + $0x108] sm:$0xff]  ;;  %v3159_v38 = vpack.c.bf16 %v268_v35, %v264_v30  ;;  %v273_v39 = vld [vmem:[%s3096_s11 + $0x98] sm:$0xff]  ;;  %s1651_s24 = sadd.s32 7, %s1650_s7  ;;  %s3630_s18 = scalar_lea.hbm %s3682_s3, %s2027_s21 }
  0x5f   : > { %2041 = vmatpush1.bf16.msra.mxu0 %v3124_v15  ;;  %v291_v37 = vld [vmem:[%s3096_s11 + $0x128] sm:$0xff]  ;;  %2071 = vmatprep.subr.bf16.mxu1 %v3154_v34  ;;  %v277_v40 = vld [vmem:[%s3096_s11 + $0xb8] sm:$0xff]  ;;  %v272_v41 = vld [vmem:[%s3096_s11 + $0x90] sm:$0xff]  ;;  %v3167_v43 = vpack.c.bf16 %v282_v33, %v278_v32  ;;  %v1082_v33 = vstv %s3220_s6  ;;  %s2901_s15 = smov [#allocation9]  }
  0x60   : > { %2043 = vmatprep.subr.bf16.mxu0 %v3129_v18  ;;  %v276_v42 = vld [vmem:[%s3096_s11 + $0xb0] sm:$0xff]  ;;  %v286_v44 = vld [vmem:[%s3096_s11 + $0x100] sm:$0xff]  ;;  %v3171_v46 = vpack.c.bf16 %v277_v40, %v273_v39  ;;  %v3175_v47 = vpack.c.bf16 %v291_v37, %v287_v36  ;;  %v295_v48 = vld [vmem:[%s3096_s11 + $0x148] sm:$0xff]  ;;  %s2811_s5 = sshll.u32 %s2901_s15, 4  ;;  %s2812_s5 = int_to_ptr.vmem [resolvable:$false] %s2811_s5 }
  0x61   : > { %v290_v45 = vld [vmem:[%s3096_s11 + $0x120] sm:$0xff]  ;;  %2073 = vmatpush1.bf16.msra.mxu1 %v3159_v38  ;;  %v3179_v49 = vpack.c.bf16 %v276_v42, %v272_v41  ;;  %v281_v50 = vld [vmem:[%s3096_s11 + $0xd8] sm:$0xff]  ;;  %v299_v52 = vld [vmem:[%s3096_s11 + $0x168] sm:$0xff] }
  0x62   : > { %v285_v51 = vld [vmem:[%s3096_s11 + $0xf8] sm:$0xff]  ;;  %2075 = vmatprep.subr.bf16.mxu1 %v3171_v46  ;;  %v280_v54 = vld [vmem:[%s3096_s11 + $0xd0] sm:$0xff]  ;;  %v3191_v56 = vpack.c.bf16 %v290_v45, %v286_v44  ;;  %v3199_v59 = vpack.c.bf16 %v299_v52, %v295_v48  ;;  %v294_v60 = vld [vmem:[%s3096_s11 + $0x140] sm:$0xff] }
  0x63   : > { %2045 = vmatpush1.bf16.msra.mxu0 %v3142_v27  ;;  %v3185_v53 = vpack.c.bf16 %v285_v51, %v281_v50  ;;  %v284_v55 = vld [vmem:[%s3096_s11 + $0xf0] sm:$0xff]  ;;  %v289_v57 = vld [vmem:[%s3096_s11 + $0x118] sm:$0xff]  ;;  %v298_v61 = vld [vmem:[%s3096_s11 + $0x160] sm:$0xff]  ;;  %v1462_v51 = vstv %s1461_s10 }
  0x64   : > { %2047 = vmatprep.subr.bf16.mxu0 %v3149_v31  ;;  %v293_v58 = vld [vmem:[%s3096_s11 + $0x138] sm:$0xff]  ;;  %v303_v62 = vld [vmem:[%s3096_s11 + $0x188] sm:$0xff]  ;;  %v3205_v63 = vpack.c.bf16 %v284_v55, %v280_v54  ;;  %v288_v4 = vld [vmem:[%s3096_s11 + $0x110] sm:$0xff]  ;;  %v3217_v13 = vpack.c.bf16 %v298_v61, %v294_v60 }
  0x65   : > { %2077 = vmatpush1.bf16.msra.mxu1 %v3179_v49  ;;  %v307_v2 = vld [vmem:[%s3096_s11 + $0x1a8] sm:$0xff]  ;;  %v3209_v3 = vpack.c.bf16 %v293_v58, %v289_v57  ;;  %v292_v6 = vld [vmem:[%s3096_s11 + $0x130] sm:$0xff]  ;;  %v297_v7 = vld [vmem:[%s3096_s11 + $0x158] sm:$0xff] }
  0x66   : > { %2079 = vmatprep.subr.bf16.mxu1 %v3185_v53  ;;  %v301_v8 = vld [vmem:[%s3096_s11 + $0x178] sm:$0xff]  ;;  %v302_v14 = vld [vmem:[%s3096_s11 + $0x180] sm:$0xff]  ;;  %v3224_v16 = vpack.c.bf16 %v307_v2, %v303_v62  ;;  %v311_v19 = vld [vmem:[%s3096_s11 + $0x1c8] sm:$0xff]  ;;  %v3229_v20 = vpack.c.bf16 %v292_v6, %v288_v4 }
  0x67   : > { %2049 = vmatpush1.bf16.msra.mxu0 %v3167_v43  ;;  %v306_v17 = vld [vmem:[%s3096_s11 + $0x1a0] sm:$0xff]  ;;  %v3234_v21 = vld [vmem:[%s3679_s0] sm:$0xff]  ;;  %v315_v22 = vld [vmem:[%s3096_s11 + $0x1e8] sm:$0xff]  ;;  %v3238_v24 = vpack.c.bf16 %v301_v8, %v297_v7 }
  0x68   : > { %2051 = vmatprep.subr.bf16.mxu0 %v3175_v47  ;;  %v296_v25 = vld [vmem:[%s3096_s11 + $0x150] sm:$0xff]  ;;  %vm324_vm0 = vcmp.lt.s32.totalorder %v323_v11, %v3234_v21  ;;  %vm513_vm1 = vcmp.lt.s32.totalorder %v512_v12, %v3234_v21  ;;  %v305_v29 = vld [vmem:[%s3096_s11 + $0x198] sm:$0xff]  ;;  %v3249_v35 = vpack.c.bf16 %v306_v17, %v302_v14  ;;  %v3252_v36 = vpack.c.bf16 %v315_v22, %v311_v19  ;;  %v310_v37 = vld [vmem:[%s3096_s11 + $0x1c0] sm:$0xff] }
  0x69   : > { %2081 = vmatpush1.bf16.msra.mxu1 %v3205_v63  ;;  %v300_v28 = vld [vmem:[%s3096_s11 + $0x170] sm:$0xff]  ;;  %v309_v30 = vld [vmem:[%s3096_s11 + $0x1b8] sm:$0xff]  ;;  %v497_v32 = vsel %vm324_vm0, 1, %v2900_v1  ;;  %v314_v39 = vld [vmem:[%s3096_s11 + $0x1e0] sm:$0xff]  ;;  %v687_v41 = vsel %vm513_vm1, 1, %v2900_v1  ;;  %vm1083_vm2 = vcmp.lt.s32.totalorder %v1082_v33, %v3234_v21  ;;  %vm1463_vm3 = vcmp.lt.s32.totalorder %v1462_v51, %v3234_v21 }
  0x6a   : > { %2083 = vmatprep.subr.bf16.mxu1 %v3209_v3  ;;  %499 = vperm.xlu0 %2617, %v497_v32   ;;  %v3257_v40 = vpack.c.bf16 %v300_v28, %v296_v25  ;;  %v3261_v42 = vpack.c.bf16 %v309_v30, %v305_v29  ;;  %v304_v44 = vld [vmem:[%s3096_s11 + $0x190] sm:$0xff]  ;;  %v313_v48 = vld [vmem:[%s3096_s11 + $0x1d8] sm:$0xff]  ;;  %v3269_v52 = vpack.c.bf16 %v314_v39, %v310_v37  ;;  %v1257_v55 = vsel %vm1083_vm2, 1, %v2900_v1  ;;  %v326_v2 = vld [vmem:[%s3088_s9] sm:$0xff] }
  0x6b   : > { %2053 = vmatpush1.bf16.msra.mxu0 %v3191_v56  ;;  %v308_v45 = vld [vmem:[%s3096_s11 + $0x1b0] sm:$0xff]  ;;  %v317_v50 = vld [vmem:[%s3096_s11 + $0x1f8] sm:$0xff]  ;;  %v1637_v62 = vsel %vm1463_vm3, 1, %v2900_v1  ;;  %v327_v4 = vld [vmem:[%s3088_s9 + $0x8] sm:$0xff] }
  0x6c   : > { %2055 = vmatprep.subr.bf16.mxu0 %v3199_v59  ;;  %v3273_v54 = vpack.c.bf16 %v308_v45, %v304_v44  ;;  %v3277_v57 = vpack.c.bf16 %v317_v50, %v313_v48  ;;  %v312_v58 = vld [vmem:[%s3096_s11 + $0x1d0] sm:$0xff]  ;;  %v329_v17 = vld [vmem:[%s3088_s9 + $0x18] sm:$0xff] }
  0x6d   : > { %2085 = vmatpush1.bf16.msra.mxu1 %v3229_v20  ;;  %v316_v60 = vld [vmem:[%s3096_s11 + $0x1f0] sm:$0xff]  ;;  %s1271_s11 = sadd.s32 5, %s1270_s22 }
  0x6e   : > { %2087 = vmatprep.subr.bf16.mxu1 %v3238_v24  ;;  %689 = vperm.xlu0 %2617, %v687_v41   ;;  %v3284_v61 = vpack.c.bf16 %v316_v60, %v312_v58  ;;  %v328_v28 = vld [vmem:[%s3088_s9 + $0x10] sm:$0xff] }
  0x6f   : > { %2057 = vmatpush1.bf16.msra.mxu0 %v3217_v13 }
  0x70   : > { %2059 = vmatprep.subr.bf16.mxu0 %v3224_v16 }
  0x71   : > { %2089 = vmatpush1.bf16.msra.mxu1 %v3257_v40 }
  0x72   : > { %2091 = vmatprep.subr.bf16.mxu1 %v3261_v42  ;;  %1259 = vperm.xlu0 %2617, %v1257_v55  }
  0x73   : > { %2061 = vmatpush1.bf16.msra.mxu0 %v3249_v35 }
  0x74   : > { %2063 = vmatprep.subr.bf16.mxu0 %v3252_v36 }
  0x75   : > { %2093 = vmatpush1.bf16.msra.mxu1 %v3273_v54 }
  0x76   : > { %2095 = vmatprep.subr.bf16.mxu1 %v3277_v57  ;;  %1639 = vperm.xlu0 %2617, %v1637_v62  }
  0x77   : > { %2065 = vmatpush1.bf16.msra.mxu0 %v3269_v52 }
  0x78   : > { %2099 = vmatprep.subr.bf16.mxu0 %v3109_v5 }
  0x79   : > { %2097 = vmatpush1.bf16.msra.mxu1 %v3284_v61 }
  0x7a   : > { %395 = vmatmul.mubr.f32.vlgmr.msra.gmra.mrb[0].mxu0 %v2899_v0  ;;  %2131 = vmatprep.subr.bf16.mxu1 %v3135_v23 }
  0x7b   : > { %2101 = vmatpush1.bf16.msra.mxu0 %v3114_v9  ;;  %584 = vmatprep.mubr.f32.mxu0 %v2899_v0 }
  0x7c   : > { %2103 = vmatprep.subr.bf16.mxu0 %v3116_v10  ;;  %466 = vmatmul.mubr.f32.vlgmr.msra.gmra.mrb[0].mxu1 %v2899_v0 }
  0x7d   : > { %2133 = vmatpush1.bf16.msra.mxu1 %v3139_v26  ;;  %655 = vmatprep.mubr.f32.mxu1 %v2899_v0 }
  0x7e   : > { %2135 = vmatprep.subr.bf16.mxu1 %v3154_v34 }
  0x7f   : > { %2105 = vmatpush1.bf16.msra.mxu0 %v3124_v15 }
  0x80   : > { %2107 = vmatprep.subr.bf16.mxu0 %v3129_v18 }
  0x81   : > { %2137 = vmatpush1.bf16.msra.mxu1 %v3159_v38 }
  0x82   : > { %2139 = vmatprep.subr.bf16.mxu1 %v3171_v46 }
  0x83   : > { %2109 = vmatpush1.bf16.msra.mxu0 %v3142_v27 }
  0x84   : > { %2111 = vmatprep.subr.bf16.mxu0 %v3149_v31 }
  0x85   : > { %2141 = vmatpush1.bf16.msra.mxu1 %v3179_v49 }
  0x86   : > { %2143 = vmatprep.subr.bf16.mxu1 %v3185_v53 }
  0x87   : > { %2113 = vmatpush1.bf16.msra.mxu0 %v3167_v43 }
  0x88   : > { %2115 = vmatprep.subr.bf16.mxu0 %v3175_v47 }
  0x89   : > { %2145 = vmatpush1.bf16.msra.mxu1 %v3205_v63 }
  0x8a   : > { %2147 = vmatprep.subr.bf16.mxu1 %v3209_v3 }
  0x8b   : > { %2117 = vmatpush1.bf16.msra.mxu0 %v3191_v56 }
  0x8c   : > { %2119 = vmatprep.subr.bf16.mxu0 %v3199_v59 }
  0x8d   : > { %2149 = vmatpush1.bf16.msra.mxu1 %v3229_v20 }
  0x8e   : > { %2151 = vmatprep.subr.bf16.mxu1 %v3238_v24 }
  0x8f   : > { %2121 = vmatpush1.bf16.msra.mxu0 %v3217_v13 }
  0x90   : > { %2123 = vmatprep.subr.bf16.mxu0 %v3224_v16 }
  0x91   : > { %2153 = vmatpush1.bf16.msra.mxu1 %v3257_v40 }
  0x92   : > { %2155 = vmatprep.subr.bf16.mxu1 %v3261_v42 }
  0x93   : > { %2125 = vmatpush1.bf16.msra.mxu0 %v3249_v35 }
  0x94   : > { %2127 = vmatprep.subr.bf16.mxu0 %v3252_v36 }
  0x95   : > { %2157 = vmatpush1.bf16.msra.mxu1 %v3273_v54 }
  0x96   : > { %2159 = vmatprep.subr.bf16.mxu1 %v3277_v57 }
  0x97   : > { %2129 = vmatpush1.bf16.msra.mxu0 %v3269_v52 }
  0x98   : > { %2163 = vmatprep.subr.bf16.mxu0 %v3109_v5 }
  0x99   : > { %2161 = vmatpush1.bf16.msra.mxu1 %v3284_v61 }
  0x9a   : > { %2195 = vmatprep.subr.bf16.mxu1 %v3135_v23 }
  0xe9   : > { %v500_v50 = vpop.permute.xlu0 %499 }
  0xea   : > { %vm501_vm4 = vcmp.eq.s32.totalorder %v500_v50, 1 }
 0x14d   : > { %v396_v6 = vpop.f32.mrb[0].mxu0 }
 0x14e   : > { %v397_v7 = vadd.f32 %v396_v6, %v326_v2  ;;  %v398_v8 = vpop.f32.mrb[1].mxu0 }
 0x14f   : > { %v399_v11 = vadd.f32 %v398_v8, %v327_v4  ;;  %v467_v19 = vpop.f32.mrb[0].mxu1  ;;  %v892_v8 = vstv %s891_s19  ;;  %s2813_s19 = scalar_lea.vmem %s2812_s5, 256 }
 0x150   : > { %v1974_v12 = vmul.f32 -1.442695, %v397_v7  ;;  %v469_v22 = vpop.f32.mrb[1].mxu1  ;;  %v468_v30 = vadd.f32 %v467_v19, %v328_v28  ;;  %vm893_vm6 = vcmp.lt.s32.totalorder %v892_v8, %v3234_v21  ;;  %v1652_v19 = vstv %s1651_s24  ;;  %v1977_v28 = vld [vmem:[%s3088_s9 + $0x20] sm:$0xff] }
 0x151   : > { %v1975_v14 = vmul.f32 -1.442695, %v399_v11  ;;  %v470_v25 = vadd.f32 %v469_v22, %v329_v17  ;;  %v702_v11 = vstv %s701_s28  ;;  %v1067_v17 = vsel %vm893_vm6, 1, %v2900_v1 }
 0x152   : > { %2619 = vpow2.f32 %v1974_v12  ;;  %vm703_vm5 = vcmp.lt.s32.totalorder %v702_v11, %v3234_v21  ;;  %vm1653_vm8 = vcmp.lt.s32.totalorder %v1652_v19, %v3234_v21  ;;  %v690_v19 = vpop.permute.xlu0 %689 }
 0x153   : > { %2621 = vpow2.f32 %v1975_v14  ;;  %v1976_v29 = vmul.f32 -1.442695, %v470_v25  ;;  %v877_v12 = vsel %vm703_vm5, 1, %v2900_v1  ;;  %v1272_v14 = vstv %s1271_s11 }
 0x154   : > { %879 = vperm.xlu1 %2618, %v877_v12   ;;  %vm1273_vm7 = vcmp.lt.s32.totalorder %v1272_v14, %v3234_v21  ;;  %v1827_v25 = vsel %vm1653_vm8, 1, %v2900_v1  ;;  %v1979_v21 = vld [vmem:[%s3088_s9 + $0x30] sm:$0xff]  ;;  %vm691_vm9 = vcmp.eq.s32.totalorder %v690_v19, 1 }
 0x155   : > { %2623 = vpow2.f32 %v1976_v29  ;;  %v1447_v22 = vsel %vm1273_vm7, 1, %v2900_v1  ;;  %v1978_v29 = vld [vmem:[%s3088_s9 + $0x28] sm:$0xff] }
 0x156   : > { %2625 = vtanh.f32 %v468_v30 }
 0x158   : > { %1069 = vperm.xlu1 %2618, %v1067_v17  }
 0x15c   : > { %v2620_v32 = vpop.eup %2619  ;;  %1449 = vperm.xlu1 %2618, %v1447_v22  }
 0x15d   : > { %v2622_v33 = vpop.eup %2621  ;;  %v475_v37 = vadd.f32 1.0, %v2620_v32 }
 0x15e   : > { %v481_v39 = vadd.f32 1.0, %v2622_v33 }
 0x15f   : > { %2627 = vrcp.f32 %v475_v37  ;;  %v2624_v41 = vpop.eup %2623 }
 0x160   : > { %2629 = vrcp.f32 %v481_v39  ;;  %v2626_v44 = vpop.eup %2625  ;;  %v488_v48 = vadd.f32 1.0, %v2624_v41  ;;  %1829 = vperm.xlu1 %2618, %v1827_v25  }
 0x162   : > { %2631 = vrcp.f32 %v488_v48  ;;  %v1980_v48 = vld [vmem:[%s3088_s9 + $0x38] sm:$0xff] }
 0x169   : > { %v2628_v45 = vpop.eup %2627 }
 0x16a   : > { %v2630_v51 = vpop.eup %2629  ;;  %v493_v55 = vmul.f32 %v2628_v45, %v2626_v44 }
 0x16b   : > { %v492_v58 = vmul.f32 0.0, %v2630_v51 }
 0x16c   : > { %v2632_v2 = vpop.eup %2631 }
 0x16d   : > { %v494_v60 = vadd.f32 %v493_v55, %v492_v58 }
 0x16f   : > { %2633 = vtanh.f32 %v494_v60  ;;  %v3331_v62 = vsel %vm501_vm4, %v494_v60, 0.0 }
 0x179   : > { %v2634_v4 = vpop.eup %2633 }
 0x17a   : > { %v496_v6 = vmul.f32 %v2634_v4, %v2632_v2 }
 0x17c   : > { %v3333_v7 = vsel %vm501_vm4, %v496_v6, 0.0  ;;  %2032 = vmatmul.mubr.msk.f32.vlgmr.msra.gmra.mrb[2].mxu0 %vm501_vm4, %v496_v6  ;;  %2033 = vmatmul.mubr.msk.f32.vlgmr.msra.gmra.mrb[2].mxu1 %vm501_vm4, %v496_v6 }
 0x17d   : > { %2165 = vmatpush1.bf16.msra.mxu0 %v3114_v9  ;;  %2197 = vmatpush1.bf16.msra.mxu1 %v3139_v26 }
 0x17e   : > { %2167 = vmatprep.subr.bf16.mxu0 %v3116_v10  ;;  %2199 = vmatprep.subr.bf16.mxu1 %v3154_v34 }
 0x17f   : > { %774 = vmatprep.mubr.f32.mxu0 %v2899_v0  ;;  %845 = vmatprep.mubr.f32.mxu1 %v2899_v0 }
 0x181   : > { %2169 = vmatpush1.bf16.msra.mxu0 %v3124_v15  ;;  %2201 = vmatpush1.bf16.msra.mxu1 %v3159_v38 }
 0x182   : > { %2171 = vmatprep.subr.bf16.mxu0 %v3129_v18  ;;  %2203 = vmatprep.subr.bf16.mxu1 %v3171_v46 }
 0x185   : > { %2173 = vmatpush1.bf16.msra.mxu0 %v3142_v27  ;;  %2205 = vmatpush1.bf16.msra.mxu1 %v3179_v49 }
 0x186   : > { %2175 = vmatprep.subr.bf16.mxu0 %v3149_v31  ;;  %2207 = vmatprep.subr.bf16.mxu1 %v3185_v53 }
 0x189   : > { %2177 = vmatpush1.bf16.msra.mxu0 %v3167_v43  ;;  %2209 = vmatpush1.bf16.msra.mxu1 %v3205_v63 }
 0x18a   : > { %2179 = vmatprep.subr.bf16.mxu0 %v3175_v47  ;;  %2211 = vmatprep.subr.bf16.mxu1 %v3209_v3 }
 0x18d   : > { %2181 = vmatpush1.bf16.msra.mxu0 %v3191_v56  ;;  %2213 = vmatpush1.bf16.msra.mxu1 %v3229_v20 }
 0x18e   : > { %2183 = vmatprep.subr.bf16.mxu0 %v3199_v59  ;;  %2215 = vmatprep.subr.bf16.mxu1 %v3238_v24 }
 0x191   : > { %2185 = vmatpush1.bf16.msra.mxu0 %v3217_v13  ;;  %2217 = vmatpush1.bf16.msra.mxu1 %v3257_v40 }
 0x192   : > { %2187 = vmatprep.subr.bf16.mxu0 %v3224_v16  ;;  %2219 = vmatprep.subr.bf16.mxu1 %v3261_v42 }
 0x195   : > { %2189 = vmatpush1.bf16.msra.mxu0 %v3249_v35  ;;  %2221 = vmatpush1.bf16.msra.mxu1 %v3273_v54 }
 0x196   : > { %2191 = vmatprep.subr.bf16.mxu0 %v3252_v36  ;;  %2223 = vmatprep.subr.bf16.mxu1 %v3277_v57 }
 0x199   : > { %2193 = vmatpush1.bf16.msra.mxu0 %v3269_v52  ;;  %2225 = vmatpush1.bf16.msra.mxu1 %v3284_v61 }
 0x19a   : > { %2227 = vmatprep.subr.bf16.mxu0 %v3109_v5  ;;  %2259 = vmatprep.subr.bf16.mxu1 %v3135_v23 }
 0x24f   : > { %v586_v30 = vpop.f32.mrb[2].mxu0  ;;  %v657_v32 = vpop.f32.mrb[2].mxu1 }
 0x250   : > { %v587_v33 = vadd.f32 %v1977_v28, %v586_v30  ;;  %v588_v37 = vpop.f32.mrb[3].mxu0  ;;  %v659_v39 = vpop.f32.mrb[3].mxu1  ;;  %v658_v55 = vadd.f32 %v1979_v21, %v657_v32  ;;  %v1987_v21 = vld [vmem:[%s3088_s9 + $0x58] sm:$0xff] }
 0x251   : > { %v589_v41 = vadd.f32 %v1978_v29, %v588_v37  ;;  %v660_v50 = vadd.f32 %v1980_v48, %v659_v39 }
 0x252   : > { %v1981_v44 = vmul.f32 -1.442695, %v587_v33 }
 0x253   : > { %v1982_v45 = vmul.f32 -1.442695, %v589_v41  ;;  %v1983_v51 = vmul.f32 -1.442695, %v660_v50 }
 0x254   : > { %2635 = vpow2.f32 %v1981_v44 }
 0x255   : > { %2637 = vpow2.f32 %v1982_v45 }
 0x256   : > { %2639 = vpow2.f32 %v1983_v51 }
 0x257   : > { %2641 = vtanh.f32 %v658_v55  ;;  %v1986_v55 = vld [vmem:[%s3088_s9 + $0x50] sm:$0xff] }
 0x25e   : > { %v2636_v1 = vpop.eup %2635 }
 0x25f   : > { %v2638_v58 = vpop.eup %2637  ;;  %v665_v60 = vadd.f32 1.0, %v2636_v1 }
 0x260   : > { %v671_v2 = vadd.f32 1.0, %v2638_v58  ;;  %v2640_v4 = vpop.eup %2639 }
 0x261   : > { %2643 = vrcp.f32 %v665_v60  ;;  %v2642_v6 = vpop.eup %2641  ;;  %v678_v14 = vadd.f32 1.0, %v2640_v4 }
 0x262   : > { %2645 = vrcp.f32 %v671_v2 }
 0x263   : > { %2647 = vrcp.f32 %v678_v14  ;;  %v880_v14 = vpop.permute.xlu1 %879 }
 0x264   : > { %vm881_vm10 = vcmp.eq.s32.totalorder %v880_v14, 1 }
 0x26b   : > { %v2644_v8 = vpop.eup %2643 }
 0x26c   : > { %v2646_v11 = vpop.eup %2645  ;;  %v683_v12 = vmul.f32 %v2644_v8, %v2642_v6 }
 0x26d   : > { %v682_v17 = vmul.f32 %v2646_v11, %v3331_v62  ;;  %v2648_v28 = vpop.eup %2647 }
 0x26f   : > { %v684_v22 = vadd.f32 %v683_v12, %v682_v17 }
 0x271   : > { %2649 = vtanh.f32 %v684_v22  ;;  %v3387_v25 = vsel %vm691_vm9, %v684_v22, %v3331_v62  ;;  %v1984_v62 = vld [vmem:[%s3088_s9 + $0x40] sm:$0xff] }
 0x27b   : > { %v2650_v29 = vpop.eup %2649 }
 0x27c   : > { %v686_v30 = vmul.f32 %v2650_v29, %v2648_v28 }
 0x27e   : > { %v3390_v32 = vsel %vm691_vm9, %v686_v30, %v3333_v7  ;;  %v1985_v7 = vld [vmem:[%s3088_s9 + $0x48] sm:$0xff] }
 0x27f   : > { %775 = vmatmul.mubr.f32.vlgmr.msra.gmra.mrb[4].mxu0 %v3390_v32  ;;  %846 = vmatmul.mubr.f32.vlgmr.msra.gmra.mrb[4].mxu1 %v3390_v32 }
 0x280   : > { %2229 = vmatpush1.bf16.msra.mxu0 %v3114_v9  ;;  %2261 = vmatpush1.bf16.msra.mxu1 %v3139_v26 }
 0x281   : > { %2231 = vmatprep.subr.bf16.mxu0 %v3116_v10  ;;  %2263 = vmatprep.subr.bf16.mxu1 %v3154_v34 }
 0x282   : > { %964 = vmatprep.mubr.f32.mxu0 %v2899_v0  ;;  %1035 = vmatprep.mubr.f32.mxu1 %v2899_v0 }
 0x284   : > { %2233 = vmatpush1.bf16.msra.mxu0 %v3124_v15  ;;  %2265 = vmatpush1.bf16.msra.mxu1 %v3159_v38 }
 0x285   : > { %2235 = vmatprep.subr.bf16.mxu0 %v3129_v18  ;;  %2267 = vmatprep.subr.bf16.mxu1 %v3171_v46 }
 0x288   : > { %2237 = vmatpush1.bf16.msra.mxu0 %v3142_v27  ;;  %2269 = vmatpush1.bf16.msra.mxu1 %v3179_v49 }
 0x289   : > { %2239 = vmatprep.subr.bf16.mxu0 %v3149_v31  ;;  %2271 = vmatprep.subr.bf16.mxu1 %v3185_v53 }
 0x28c   : > { %2241 = vmatpush1.bf16.msra.mxu0 %v3167_v43  ;;  %2273 = vmatpush1.bf16.msra.mxu1 %v3205_v63 }
 0x28d   : > { %2243 = vmatprep.subr.bf16.mxu0 %v3175_v47  ;;  %2275 = vmatprep.subr.bf16.mxu1 %v3209_v3 }
 0x290   : > { %2245 = vmatpush1.bf16.msra.mxu0 %v3191_v56  ;;  %2277 = vmatpush1.bf16.msra.mxu1 %v3229_v20 }
 0x291   : > { %2247 = vmatprep.subr.bf16.mxu0 %v3199_v59  ;;  %2279 = vmatprep.subr.bf16.mxu1 %v3238_v24 }
 0x294   : > { %2249 = vmatpush1.bf16.msra.mxu0 %v3217_v13  ;;  %2281 = vmatpush1.bf16.msra.mxu1 %v3257_v40 }
 0x295   : > { %2251 = vmatprep.subr.bf16.mxu0 %v3224_v16  ;;  %2283 = vmatprep.subr.bf16.mxu1 %v3261_v42 }
 0x298   : > { %2253 = vmatpush1.bf16.msra.mxu0 %v3249_v35  ;;  %2285 = vmatpush1.bf16.msra.mxu1 %v3273_v54 }
 0x299   : > { %2255 = vmatprep.subr.bf16.mxu0 %v3252_v36  ;;  %2287 = vmatprep.subr.bf16.mxu1 %v3277_v57 }
 0x29c   : > { %2257 = vmatpush1.bf16.msra.mxu0 %v3269_v52  ;;  %2289 = vmatpush1.bf16.msra.mxu1 %v3284_v61 }
 0x29d   : > { %2291 = vmatprep.subr.bf16.mxu0 %v3109_v5  ;;  %2323 = vmatprep.subr.bf16.mxu1 %v3135_v23 }
 0x352   : > { %v776_v33 = vpop.f32.mrb[4].mxu0  ;;  %v847_v37 = vpop.f32.mrb[4].mxu1 }
 0x353   : > { %v777_v39 = vadd.f32 %v1984_v62, %v776_v33  ;;  %v778_v41 = vpop.f32.mrb[5].mxu0  ;;  %v849_v44 = vpop.f32.mrb[5].mxu1  ;;  %v848_v58 = vadd.f32 %v1986_v55, %v847_v37  ;;  %v1994_v55 = vld [vmem:[%s3088_s9 + $0x78] sm:$0xff] }
 0x354   : > { %v779_v45 = vadd.f32 %v1985_v7, %v778_v41  ;;  %v850_v51 = vadd.f32 %v1987_v21, %v849_v44 }
 0x355   : > { %v1988_v48 = vmul.f32 -1.442695, %v777_v39 }
 0x356   : > { %v1989_v50 = vmul.f32 -1.442695, %v779_v45  ;;  %v1990_v1 = vmul.f32 -1.442695, %v850_v51 }
 0x357   : > { %2651 = vpow2.f32 %v1988_v48 }
 0x358   : > { %2653 = vpow2.f32 %v1989_v50 }
 0x359   : > { %2655 = vpow2.f32 %v1990_v1 }
 0x35a   : > { %2657 = vtanh.f32 %v848_v58  ;;  %v1993_v58 = vld [vmem:[%s3088_s9 + $0x70] sm:$0xff] }
 0x361   : > { %v2652_v60 = vpop.eup %2651 }
 0x362   : > { %v2654_v2 = vpop.eup %2653  ;;  %v855_v4 = vadd.f32 1.0, %v2652_v60 }
 0x363   : > { %v861_v6 = vadd.f32 1.0, %v2654_v2  ;;  %v2656_v8 = vpop.eup %2655 }
 0x364   : > { %2659 = vrcp.f32 %v855_v4  ;;  %v2658_v11 = vpop.eup %2657  ;;  %v868_v19 = vadd.f32 1.0, %v2656_v8 }
 0x365   : > { %2661 = vrcp.f32 %v861_v6 }
 0x366   : > { %2663 = vrcp.f32 %v868_v19 }
 0x36e   : > { %v2660_v12 = vpop.eup %2659 }
 0x36f   : > { %v2662_v17 = vpop.eup %2661  ;;  %v873_v22 = vmul.f32 %v2660_v12, %v2658_v11 }
 0x370   : > { %v872_v28 = vmul.f32 %v2662_v17, %v3387_v25  ;;  %v2664_v62 = vpop.eup %2663 }
 0x372   : > { %v874_v29 = vadd.f32 %v873_v22, %v872_v28 }
 0x374   : > { %2665 = vtanh.f32 %v874_v29  ;;  %v3434_v30 = vsel %vm881_vm10, %v874_v29, %v3387_v25  ;;  %v1991_v25 = vld [vmem:[%s3088_s9 + $0x60] sm:$0xff] }
 0x37e   : > { %v2666_v7 = vpop.eup %2665 }
 0x37f   : > { %v876_v33 = vmul.f32 %v2666_v7, %v2664_v62  ;;  %v1070_v62 = vpop.permute.xlu1 %1069 }
 0x380   : > { %vm1071_vm11 = vcmp.eq.s32.totalorder %v1070_v62, 1 }
 0x381   : > { %v3437_v37 = vsel %vm881_vm10, %v876_v33, %v3390_v32  ;;  %v1992_v32 = vld [vmem:[%s3088_s9 + $0x68] sm:$0xff] }
 0x382   : > { %965 = vmatmul.mubr.f32.vlgmr.msra.gmra.mrb[6].mxu0 %v3437_v37  ;;  %1036 = vmatmul.mubr.f32.vlgmr.msra.gmra.mrb[6].mxu1 %v3437_v37 }
 0x383   : > { %2293 = vmatpush1.bf16.msra.mxu0 %v3114_v9  ;;  %2325 = vmatpush1.bf16.msra.mxu1 %v3139_v26 }
 0x384   : > { %2295 = vmatprep.subr.bf16.mxu0 %v3116_v10  ;;  %2327 = vmatprep.subr.bf16.mxu1 %v3154_v34 }
 0x385   : > { %1154 = vmatprep.mubr.f32.mxu0 %v2899_v0  ;;  %1225 = vmatprep.mubr.f32.mxu1 %v2899_v0 }
 0x387   : > { %2297 = vmatpush1.bf16.msra.mxu0 %v3124_v15  ;;  %2329 = vmatpush1.bf16.msra.mxu1 %v3159_v38 }
 0x388   : > { %2299 = vmatprep.subr.bf16.mxu0 %v3129_v18  ;;  %2331 = vmatprep.subr.bf16.mxu1 %v3171_v46 }
 0x38b   : > { %2301 = vmatpush1.bf16.msra.mxu0 %v3142_v27  ;;  %2333 = vmatpush1.bf16.msra.mxu1 %v3179_v49 }
 0x38c   : > { %2303 = vmatprep.subr.bf16.mxu0 %v3149_v31  ;;  %2335 = vmatprep.subr.bf16.mxu1 %v3185_v53 }
 0x38f   : > { %2305 = vmatpush1.bf16.msra.mxu0 %v3167_v43  ;;  %2337 = vmatpush1.bf16.msra.mxu1 %v3205_v63 }
 0x390   : > { %2307 = vmatprep.subr.bf16.mxu0 %v3175_v47  ;;  %2339 = vmatprep.subr.bf16.mxu1 %v3209_v3 }
 0x393   : > { %2309 = vmatpush1.bf16.msra.mxu0 %v3191_v56  ;;  %2341 = vmatpush1.bf16.msra.mxu1 %v3229_v20 }
 0x394   : > { %2311 = vmatprep.subr.bf16.mxu0 %v3199_v59  ;;  %2343 = vmatprep.subr.bf16.mxu1 %v3238_v24 }
 0x397   : > { %2313 = vmatpush1.bf16.msra.mxu0 %v3217_v13  ;;  %2345 = vmatpush1.bf16.msra.mxu1 %v3257_v40 }
 0x398   : > { %2315 = vmatprep.subr.bf16.mxu0 %v3224_v16  ;;  %2347 = vmatprep.subr.bf16.mxu1 %v3261_v42 }
 0x39b   : > { %2317 = vmatpush1.bf16.msra.mxu0 %v3249_v35  ;;  %2349 = vmatpush1.bf16.msra.mxu1 %v3273_v54 }
 0x39c   : > { %2319 = vmatprep.subr.bf16.mxu0 %v3252_v36  ;;  %2351 = vmatprep.subr.bf16.mxu1 %v3277_v57 }
 0x39f   : > { %2321 = vmatpush1.bf16.msra.mxu0 %v3269_v52  ;;  %2353 = vmatpush1.bf16.msra.mxu1 %v3284_v61 }
 0x3a0   : > { %2355 = vmatprep.subr.bf16.mxu0 %v3109_v5  ;;  %2387 = vmatprep.subr.bf16.mxu1 %v3135_v23 }
 0x455   : > { %v966_v39 = vpop.f32.mrb[6].mxu0  ;;  %v1037_v41 = vpop.f32.mrb[6].mxu1 }
 0x456   : > { %v967_v44 = vadd.f32 %v1991_v25, %v966_v39  ;;  %v968_v45 = vpop.f32.mrb[7].mxu0  ;;  %v1039_v48 = vpop.f32.mrb[7].mxu1  ;;  %v1038_v2 = vadd.f32 %v1993_v58, %v1037_v41  ;;  %v2001_v58 = vld [vmem:[%s3088_s9 + $0x98] sm:$0xff] }
 0x457   : > { %v969_v50 = vadd.f32 %v1992_v32, %v968_v45  ;;  %v1040_v1 = vadd.f32 %v1994_v55, %v1039_v48 }
 0x458   : > { %v1995_v21 = vmul.f32 -1.442695, %v967_v44 }
 0x459   : > { %v1996_v51 = vmul.f32 -1.442695, %v969_v50  ;;  %v1997_v60 = vmul.f32 -1.442695, %v1040_v1 }
 0x45a   : > { %2667 = vpow2.f32 %v1995_v21 }
 0x45b   : > { %2669 = vpow2.f32 %v1996_v51 }
 0x45c   : > { %2671 = vpow2.f32 %v1997_v60 }
 0x45d   : > { %2673 = vtanh.f32 %v1038_v2  ;;  %v2000_v2 = vld [vmem:[%s3088_s9 + $0x90] sm:$0xff] }
 0x464   : > { %v2668_v4 = vpop.eup %2667 }
 0x465   : > { %v2670_v6 = vpop.eup %2669  ;;  %v1045_v8 = vadd.f32 1.0, %v2668_v4 }
 0x466   : > { %v1051_v11 = vadd.f32 1.0, %v2670_v6  ;;  %v2672_v12 = vpop.eup %2671 }
 0x467   : > { %2675 = vrcp.f32 %v1045_v8  ;;  %v2674_v14 = vpop.eup %2673  ;;  %v1058_v28 = vadd.f32 1.0, %v2672_v12 }
 0x468   : > { %2677 = vrcp.f32 %v1051_v11 }
 0x469   : > { %2679 = vrcp.f32 %v1058_v28 }
 0x471   : > { %v2676_v17 = vpop.eup %2675 }
 0x472   : > { %v2678_v19 = vpop.eup %2677  ;;  %v1063_v22 = vmul.f32 %v2676_v17, %v2674_v14 }
 0x473   : > { %v1062_v29 = vmul.f32 %v2678_v19, %v3434_v30  ;;  %v2680_v25 = vpop.eup %2679 }
 0x475   : > { %v1064_v7 = vadd.f32 %v1063_v22, %v1062_v29 }
 0x477   : > { %2681 = vtanh.f32 %v1064_v7  ;;  %v3481_v33 = vsel %vm1071_vm11, %v1064_v7, %v3434_v30  ;;  %v1998_v30 = vld [vmem:[%s3088_s9 + $0x80] sm:$0xff] }
 0x481   : > { %v2682_v32 = vpop.eup %2681 }
 0x482   : > { %v1066_v39 = vmul.f32 %v2682_v32, %v2680_v25  ;;  %v1260_v25 = vpop.permute.xlu0 %1259 }
 0x483   : > { %vm1261_vm12 = vcmp.eq.s32.totalorder %v1260_v25, 1  ;;  %v1450_v25 = vpop.permute.xlu1 %1449 }
 0x484   : > { %v3484_v41 = vsel %vm1071_vm11, %v1066_v39, %v3437_v37  ;;  %v1999_v37 = vld [vmem:[%s3088_s9 + $0x88] sm:$0xff]  ;;  %vm1451_vm13 = vcmp.eq.s32.totalorder %v1450_v25, 1 }
 0x485   : > { %1155 = vmatmul.mubr.f32.vlgmr.msra.gmra.mrb[8].mxu0 %v3484_v41  ;;  %1226 = vmatmul.mubr.f32.vlgmr.msra.gmra.mrb[8].mxu1 %v3484_v41 }
 0x486   : > { %2357 = vmatpush1.bf16.msra.mxu0 %v3114_v9  ;;  %2389 = vmatpush1.bf16.msra.mxu1 %v3139_v26 }
 0x487   : > { %2359 = vmatprep.subr.bf16.mxu0 %v3116_v10  ;;  %2391 = vmatprep.subr.bf16.mxu1 %v3154_v34 }
 0x488   : > { %1344 = vmatprep.mubr.f32.mxu0 %v2899_v0  ;;  %1415 = vmatprep.mubr.f32.mxu1 %v2899_v0 }
 0x48a   : > { %2361 = vmatpush1.bf16.msra.mxu0 %v3124_v15  ;;  %2393 = vmatpush1.bf16.msra.mxu1 %v3159_v38 }
 0x48b   : > { %2363 = vmatprep.subr.bf16.mxu0 %v3129_v18  ;;  %2395 = vmatprep.subr.bf16.mxu1 %v3171_v46 }
 0x48e   : > { %2365 = vmatpush1.bf16.msra.mxu0 %v3142_v27  ;;  %2397 = vmatpush1.bf16.msra.mxu1 %v3179_v49 }
 0x48f   : > { %2367 = vmatprep.subr.bf16.mxu0 %v3149_v31  ;;  %2399 = vmatprep.subr.bf16.mxu1 %v3185_v53 }
 0x492   : > { %2369 = vmatpush1.bf16.msra.mxu0 %v3167_v43  ;;  %2401 = vmatpush1.bf16.msra.mxu1 %v3205_v63 }
 0x493   : > { %2371 = vmatprep.subr.bf16.mxu0 %v3175_v47  ;;  %2403 = vmatprep.subr.bf16.mxu1 %v3209_v3 }
 0x496   : > { %2373 = vmatpush1.bf16.msra.mxu0 %v3191_v56  ;;  %2405 = vmatpush1.bf16.msra.mxu1 %v3229_v20 }
 0x497   : > { %2375 = vmatprep.subr.bf16.mxu0 %v3199_v59  ;;  %2407 = vmatprep.subr.bf16.mxu1 %v3238_v24 }
 0x49a   : > { %2377 = vmatpush1.bf16.msra.mxu0 %v3217_v13  ;;  %2409 = vmatpush1.bf16.msra.mxu1 %v3257_v40 }
 0x49b   : > { %2379 = vmatprep.subr.bf16.mxu0 %v3224_v16  ;;  %2411 = vmatprep.subr.bf16.mxu1 %v3261_v42 }
 0x49e   : > { %2381 = vmatpush1.bf16.msra.mxu0 %v3249_v35  ;;  %2413 = vmatpush1.bf16.msra.mxu1 %v3273_v54 }
 0x49f   : > { %2383 = vmatprep.subr.bf16.mxu0 %v3252_v36  ;;  %2415 = vmatprep.subr.bf16.mxu1 %v3277_v57 }
 0x4a2   : > { %2385 = vmatpush1.bf16.msra.mxu0 %v3269_v52  ;;  %2417 = vmatpush1.bf16.msra.mxu1 %v3284_v61 }
 0x4a3   : > { %2419 = vmatprep.subr.bf16.mxu0 %v3109_v5  ;;  %2451 = vmatprep.subr.bf16.mxu1 %v3135_v23 }
 0x558   : > { %v1156_v44 = vpop.f32.mrb[8].mxu0  ;;  %v1227_v45 = vpop.f32.mrb[8].mxu1 }
 0x559   : > { %v1157_v48 = vadd.f32 %v1998_v30, %v1156_v44  ;;  %v1158_v50 = vpop.f32.mrb[9].mxu0  ;;  %v1229_v21 = vpop.f32.mrb[9].mxu1  ;;  %v1228_v6 = vadd.f32 %v2000_v2, %v1227_v45  ;;  %v2008_v2 = vld [vmem:[%s3088_s9 + $0xb8] sm:$0xff] }
 0x55a   : > { %v1159_v51 = vadd.f32 %v1999_v37, %v1158_v50  ;;  %v1230_v60 = vadd.f32 %v2001_v58, %v1229_v21 }
 0x55b   : > { %v2002_v55 = vmul.f32 -1.442695, %v1157_v48 }
 0x55c   : > { %v2003_v1 = vmul.f32 -1.442695, %v1159_v51  ;;  %v2004_v4 = vmul.f32 -1.442695, %v1230_v60 }
 0x55d   : > { %2683 = vpow2.f32 %v2002_v55 }
 0x55e   : > { %2685 = vpow2.f32 %v2003_v1 }
 0x55f   : > { %2687 = vpow2.f32 %v2004_v4 }
 0x560   : > { %2689 = vtanh.f32 %v1228_v6  ;;  %v2007_v6 = vld [vmem:[%s3088_s9 + $0xb0] sm:$0xff] }
 0x567   : > { %v2684_v8 = vpop.eup %2683 }
 0x568   : > { %v2686_v11 = vpop.eup %2685  ;;  %v1235_v12 = vadd.f32 1.0, %v2684_v8 }
 0x569   : > { %v1241_v14 = vadd.f32 1.0, %v2686_v11  ;;  %v2688_v17 = vpop.eup %2687 }
 0x56a   : > { %2691 = vrcp.f32 %v1235_v12  ;;  %v2690_v19 = vpop.eup %2689  ;;  %v1248_v62 = vadd.f32 1.0, %v2688_v17 }
 0x56b   : > { %2693 = vrcp.f32 %v1241_v14 }
 0x56c   : > { %2695 = vrcp.f32 %v1248_v62 }
 0x574   : > { %v2692_v22 = vpop.eup %2691 }
 0x575   : > { %v2694_v28 = vpop.eup %2693  ;;  %v1253_v29 = vmul.f32 %v2692_v22, %v2690_v19 }
 0x576   : > { %v1252_v7 = vmul.f32 %v2694_v28, %v3481_v33  ;;  %v2696_v30 = vpop.eup %2695 }
 0x578   : > { %v1254_v32 = vadd.f32 %v1253_v29, %v1252_v7 }
 0x57a   : > { %2697 = vtanh.f32 %v1254_v32  ;;  %v3528_v39 = vsel %vm1261_vm12, %v1254_v32, %v3481_v33  ;;  %v2005_v33 = vld [vmem:[%s3088_s9 + $0xa0] sm:$0xff] }
 0x584   : > { %v2698_v37 = vpop.eup %2697 }
 0x585   : > { %v1256_v44 = vmul.f32 %v2698_v37, %v2696_v30 }
 0x587   : > { %v3531_v45 = vsel %vm1261_vm12, %v1256_v44, %v3484_v41  ;;  %v2006_v41 = vld [vmem:[%s3088_s9 + $0xa8] sm:$0xff] }
 0x588   : > { %1345 = vmatmul.mubr.f32.vlgmr.msra.gmra.mrb[10].mxu0 %v3531_v45  ;;  %1416 = vmatmul.mubr.f32.vlgmr.msra.gmra.mrb[10].mxu1 %v3531_v45 }
 0x589   : > { %2421 = vmatpush1.bf16.msra.mxu0 %v3114_v9  ;;  %2453 = vmatpush1.bf16.msra.mxu1 %v3139_v26 }
 0x58a   : > { %2423 = vmatprep.subr.bf16.mxu0 %v3116_v10  ;;  %2455 = vmatprep.subr.bf16.mxu1 %v3154_v34 }
 0x58b   : > { %1534 = vmatprep.mubr.f32.mxu0 %v2899_v0  ;;  %1605 = vmatprep.mubr.f32.mxu1 %v2899_v0 }
 0x58d   : > { %2425 = vmatpush1.bf16.msra.mxu0 %v3124_v15  ;;  %2457 = vmatpush1.bf16.msra.mxu1 %v3159_v38 }
 0x58e   : > { %2427 = vmatprep.subr.bf16.mxu0 %v3129_v18  ;;  %2459 = vmatprep.subr.bf16.mxu1 %v3171_v46 }
 0x591   : > { %2429 = vmatpush1.bf16.msra.mxu0 %v3142_v27  ;;  %2461 = vmatpush1.bf16.msra.mxu1 %v3179_v49 }
 0x592   : > { %2431 = vmatprep.subr.bf16.mxu0 %v3149_v31  ;;  %2463 = vmatprep.subr.bf16.mxu1 %v3185_v53 }
 0x595   : > { %2433 = vmatpush1.bf16.msra.mxu0 %v3167_v43  ;;  %2465 = vmatpush1.bf16.msra.mxu1 %v3205_v63 }
 0x596   : > { %2435 = vmatprep.subr.bf16.mxu0 %v3175_v47  ;;  %2467 = vmatprep.subr.bf16.mxu1 %v3209_v3 }
 0x599   : > { %2437 = vmatpush1.bf16.msra.mxu0 %v3191_v56  ;;  %2469 = vmatpush1.bf16.msra.mxu1 %v3229_v20 }
 0x59a   : > { %2439 = vmatprep.subr.bf16.mxu0 %v3199_v59  ;;  %2471 = vmatprep.subr.bf16.mxu1 %v3238_v24 }
 0x59d   : > { %2441 = vmatpush1.bf16.msra.mxu0 %v3217_v13  ;;  %2473 = vmatpush1.bf16.msra.mxu1 %v3257_v40 }
 0x59e   : > { %2443 = vmatprep.subr.bf16.mxu0 %v3224_v16  ;;  %2475 = vmatprep.subr.bf16.mxu1 %v3261_v42 }
 0x5a1   : > { %2445 = vmatpush1.bf16.msra.mxu0 %v3249_v35  ;;  %2477 = vmatpush1.bf16.msra.mxu1 %v3273_v54 }
 0x5a2   : > { %2447 = vmatprep.subr.bf16.mxu0 %v3252_v36  ;;  %2479 = vmatprep.subr.bf16.mxu1 %v3277_v57 }
 0x5a5   : > { %2449 = vmatpush1.bf16.msra.mxu0 %v3269_v52  ;;  %2481 = vmatpush1.bf16.msra.mxu1 %v3284_v61 }
 0x5a6   : > { %2483 = vmatprep.subr.bf16.mxu0 %v3109_v5  ;;  %2515 = vmatprep.subr.bf16.mxu1 %v3135_v23 }
 0x65b   : > { %v1346_v48 = vpop.f32.mrb[10].mxu0  ;;  %v1417_v50 = vpop.f32.mrb[10].mxu1 }
 0x65c   : > { %v1347_v21 = vadd.f32 %v2005_v33, %v1346_v48  ;;  %v1348_v51 = vpop.f32.mrb[11].mxu0  ;;  %v1419_v55 = vpop.f32.mrb[11].mxu1  ;;  %v1418_v5 = vadd.f32 %v2007_v6, %v1417_v50  ;;  %v2019_v48 = vld [vmem:[%s3088_s9 + $0xe0] sm:$0xff]  ;;  %v2020_v50 = vld [vmem:[%s3088_s9 + $0xe8] sm:$0xff]  ;;  %v2022_v6 = vld [vmem:[%s3088_s9 + $0xf8] sm:$0xff] }
 0x65d   : > { %v1349_v1 = vadd.f32 %v2006_v41, %v1348_v51  ;;  %v1420_v4 = vadd.f32 %v2008_v2, %v1419_v55 }
 0x65e   : > { %v2009_v58 = vmul.f32 -1.442695, %v1347_v21 }
 0x65f   : > { %v2010_v60 = vmul.f32 -1.442695, %v1349_v1  ;;  %v2011_v8 = vmul.f32 -1.442695, %v1420_v4 }
 0x660   : > { %2699 = vpow2.f32 %v2009_v58 }
 0x661   : > { %2701 = vpow2.f32 %v2010_v60 }
 0x662   : > { %2703 = vpow2.f32 %v2011_v8 }
 0x663   : > { %2705 = vtanh.f32 %v1418_v5  ;;  %v2021_v5 = vld [vmem:[%s3088_s9 + $0xf0] sm:$0xff] }
 0x66a   : > { %v2700_v11 = vpop.eup %2699 }
 0x66b   : > { %v2702_v12 = vpop.eup %2701  ;;  %v1425_v23 = vadd.f32 1.0, %v2700_v11 }
 0x66c   : > { %v1431_v14 = vadd.f32 1.0, %v2702_v12  ;;  %v2704_v17 = vpop.eup %2703 }
 0x66d   : > { %2707 = vrcp.f32 %v1425_v23  ;;  %v2706_v19 = vpop.eup %2705  ;;  %v1438_v62 = vadd.f32 1.0, %v2704_v17 }
 0x66e   : > { %2709 = vrcp.f32 %v1431_v14 }
 0x66f   : > { %2711 = vrcp.f32 %v1438_v62 }
 0x677   : > { %v2708_v22 = vpop.eup %2707 }
 0x678   : > { %v2710_v28 = vpop.eup %2709  ;;  %v1443_v29 = vmul.f32 %v2708_v22, %v2706_v19 }
 0x679   : > { %v1442_v7 = vmul.f32 %v2710_v28, %v3528_v39  ;;  %v2712_v37 = vpop.eup %2711 }
 0x67b   : > { %v1444_v32 = vadd.f32 %v1443_v29, %v1442_v7 }
 0x67d   : > { %2713 = vtanh.f32 %v1444_v32  ;;  %v3575_v30 = vsel %vm1451_vm13, %v1444_v32, %v3528_v39 }
 0x687   : > { %v2714_v44 = vpop.eup %2713 }
 0x688   : > { %v1446_v33 = vmul.f32 %v2714_v44, %v2712_v37  ;;  %v1830_v44 = vpop.permute.xlu1 %1829 }
 0x689   : > { %vm1831_vm15 = vcmp.eq.s32.totalorder %v1830_v44, 1 }
 0x68a   : > { %v3578_v41 = vsel %vm1451_vm13, %v1446_v33, %v3531_v45 }
 0x68b   : > { %1535 = vmatmul.mubr.f32.vlgmr.msra.gmra.mrb[12].mxu0 %v3578_v41  ;;  %1606 = vmatmul.mubr.f32.vlgmr.msra.gmra.mrb[12].mxu1 %v3578_v41 }
 0x68c   : > { %2485 = vmatpush1.bf16.msra.mxu0 %v3114_v9  ;;  %2517 = vmatpush1.bf16.msra.mxu1 %v3139_v26  ;;  %v2013_v9 = vld [vmem:[%s3088_s9 + $0xc8] sm:$0xff] }
 0x68d   : > { %2487 = vmatprep.subr.bf16.mxu0 %v3116_v10  ;;  %2519 = vmatprep.subr.bf16.mxu1 %v3154_v34 }
 0x68e   : > { %1724 = vmatprep.mubr.f32.mxu0 %v2899_v0  ;;  %1795 = vmatprep.mubr.f32.mxu1 %v2899_v0  ;;  %v2012_v0 = vld [vmem:[%s3088_s9 + $0xc0] sm:$0xff] }
 0x690   : > { %2489 = vmatpush1.bf16.msra.mxu0 %v3124_v15  ;;  %2521 = vmatpush1.bf16.msra.mxu1 %v3159_v38 }
 0x691   : > { %2491 = vmatprep.subr.bf16.mxu0 %v3129_v18  ;;  %2523 = vmatprep.subr.bf16.mxu1 %v3171_v46 }
 0x694   : > { %2493 = vmatpush1.bf16.msra.mxu0 %v3142_v27  ;;  %2525 = vmatpush1.bf16.msra.mxu1 %v3179_v49 }
 0x695   : > { %2495 = vmatprep.subr.bf16.mxu0 %v3149_v31  ;;  %2527 = vmatprep.subr.bf16.mxu1 %v3185_v53 }
 0x698   : > { %2497 = vmatpush1.bf16.msra.mxu0 %v3167_v43  ;;  %2529 = vmatpush1.bf16.msra.mxu1 %v3205_v63  ;;  %v2015_v43 = vld [vmem:[%s3088_s9 + $0xd8] sm:$0xff] }
 0x699   : > { %2499 = vmatprep.subr.bf16.mxu0 %v3175_v47  ;;  %2531 = vmatprep.subr.bf16.mxu1 %v3209_v3  ;;  %v2014_v47 = vld [vmem:[%s3088_s9 + $0xd0] sm:$0xff]  ;;  %s1973_s9 = sshll.u32 %s3084_s8, 3 }
 0x69a   : > { %s245_s29 = scalar_lea.vmem [#allocation9], %s1973_s9 }
 0x69b   : > { %s1856_s4 = sshll.u32 %s245_s29, 4  ;;  %s3632_s4 = int_to_ptr.vmem [resolvable:$true] %s1856_s4 }
 0x69c   : > { %2501 = vmatpush1.bf16.msra.mxu0 %v3191_v56  ;;  %2533 = vmatpush1.bf16.msra.mxu1 %v3229_v20  ;;  %s2807_s10 = scalar_lea.vmem %s3632_s4, 128  ;;  %p2814_p7 = scmp.lt.s32.totalorder %s3632_s4, %s2812_s5 }
 0x69d   : > { %2503 = vmatprep.subr.bf16.mxu0 %v3199_v59  ;;  %2535 = vmatprep.subr.bf16.mxu1 %v3238_v24  ;;  %p2808_p0 = scmp.ne.s32.totalorder %s3632_s4, %s2807_s10  ;;  %p2815_p10 = scmp.lt.s32.totalorder %s2813_s19, %s2807_s10 }
 0x69f   : > { %p2809_p12 = pnand %p2808_p0, %p3693_p3  ;;  %p2816_p9 = por %p2815_p10, %p2814_p7 }
 0x6a0   : > { %2505 = vmatpush1.bf16.msra.mxu0 %v3217_v13  ;;  %2537 = vmatpush1.bf16.msra.mxu1 %v3257_v40  ;;  %v1640_v40 = vpop.permute.xlu0 %1639 }
 0x6a1   : > { %2507 = vmatprep.subr.bf16.mxu0 %v3224_v16  ;;  %2539 = vmatprep.subr.bf16.mxu1 %v3261_v42  ;;  %vm1641_vm14 = vcmp.eq.s32.totalorder %v1640_v40, 1  ;;  %p2810_p13 = pneg %p2809_p12 }
 0x6a3   : > { %p2817_p11 = pnand %p2816_p9, %p2810_p13 }
 0x6a4   : > { %2509 = vmatpush1.bf16.msra.mxu0 %v3249_v35  ;;  %2541 = vmatpush1.bf16.msra.mxu1 %v3273_v54 }
 0x6a5   : > { %2511 = vmatprep.subr.bf16.mxu0 %v3252_v36  ;;  %2543 = vmatprep.subr.bf16.mxu1 %v3277_v57 }
 0x6a8   : > { %2513 = vmatpush1.bf16.msra.mxu0 %v3269_v52  ;;  %2545 = vmatpush1.bf16.msra.mxu1 %v3284_v61 }
 0x75e   : > { %v1536_v10 = vpop.f32.mrb[12].mxu0  ;;  %v1607_v15 = vpop.f32.mrb[12].mxu1 }
 0x75f   : > { %v1537_v18 = vadd.f32 %v2012_v0, %v1536_v10  ;;  %v1538_v26 = vpop.f32.mrb[13].mxu0  ;;  %v1609_v27 = vpop.f32.mrb[13].mxu1  ;;  %v1608_v53 = vadd.f32 %v2014_v47, %v1607_v15 }
 0x760   : > { %v1539_v31 = vadd.f32 %v2013_v9, %v1538_v26  ;;  %v1610_v46 = vadd.f32 %v2015_v43, %v1609_v27 }
 0x761   : > { %v2016_v34 = vmul.f32 -1.442695, %v1537_v18 }
 0x762   : > { %v2017_v38 = vmul.f32 -1.442695, %v1539_v31  ;;  %v2018_v49 = vmul.f32 -1.442695, %v1610_v46 }
 0x763   : > { %2715 = vpow2.f32 %v2016_v34 }
 0x764   : > { %2717 = vpow2.f32 %v2017_v38 }
 0x765   : > { %2719 = vpow2.f32 %v2018_v49 }
 0x766   : > { %2721 = vtanh.f32 %v1608_v53 }
 0x76d   : > { %v2716_v56 = vpop.eup %2715 }
 0x76e   : > { %v2718_v59 = vpop.eup %2717  ;;  %v1615_v63 = vadd.f32 1.0, %v2716_v56 }
 0x76f   : > { %v1621_v3 = vadd.f32 1.0, %v2718_v59  ;;  %v2720_v13 = vpop.eup %2719 }
 0x770   : > { %2723 = vrcp.f32 %v1615_v63  ;;  %v2722_v16 = vpop.eup %2721  ;;  %v1628_v36 = vadd.f32 1.0, %v2720_v13 }
 0x771   : > { %2725 = vrcp.f32 %v1621_v3 }
 0x772   : > { %2727 = vrcp.f32 %v1628_v36 }
 0x77a   : > { %v2724_v20 = vpop.eup %2723 }
 0x77b   : > { %v2726_v24 = vpop.eup %2725  ;;  %v1633_v35 = vmul.f32 %v2724_v20, %v2722_v16 }
 0x77c   : > { %v1632_v42 = vmul.f32 %v2726_v24, %v3575_v30  ;;  %v2728_v57 = vpop.eup %2727 }
 0x77e   : > { %v1634_v52 = vadd.f32 %v1633_v35, %v1632_v42 }
 0x780   : > { %2729 = vtanh.f32 %v1634_v52  ;;  %v1645_v54 = vsel %vm1641_vm14, %v1634_v52, %v3575_v30 }
 0x78a   : > { %v2730_v61 = vpop.eup %2729 }
 0x78b   : > { %v1636_v39 = vmul.f32 %v2730_v61, %v2728_v57 }
 0x78d   : > { %v1642_v45 = vsel %vm1641_vm14, %v1636_v39, %v3578_v41 }
 0x78e   : > { %1725 = vmatmul.mubr.f32.vlgmr.msra.gmra.mrb[14].mxu0 %v1642_v45  ;;  %1796 = vmatmul.mubr.f32.vlgmr.msra.gmra.mrb[14].mxu1 %v1642_v45 }
 0x861   : > { %v1726_v21 = vpop.f32.mrb[14].mxu0  ;;  %v1797_v51 = vpop.f32.mrb[14].mxu1 }
 0x862   : > { %v1727_v55 = vadd.f32 %v2019_v48, %v1726_v21  ;;  %v1728_v1 = vpop.f32.mrb[15].mxu0  ;;  %v1799_v58 = vpop.f32.mrb[15].mxu1  ;;  %v1798_v12 = vadd.f32 %v2021_v5, %v1797_v51 }
 0x863   : > { %v1729_v60 = vadd.f32 %v2020_v50, %v1728_v1  ;;  %v1800_v8 = vadd.f32 %v2022_v6, %v1799_v58 }
 0x864   : > { %v2023_v2 = vmul.f32 -1.442695, %v1727_v55 }
 0x865   : > { %v2024_v4 = vmul.f32 -1.442695, %v1729_v60  ;;  %v2025_v11 = vmul.f32 -1.442695, %v1800_v8 }
 0x866   : > { %2731 = vpow2.f32 %v2023_v2 }
 0x867   : > { %2733 = vpow2.f32 %v2024_v4 }
 0x868   : > { %2735 = vpow2.f32 %v2025_v11 }
 0x869   : > { %2737 = vtanh.f32 %v1798_v12 }
 0x870   : > { %v2732_v23 = vpop.eup %2731 }
 0x871   : > { %v2734_v14 = vpop.eup %2733  ;;  %v1805_v17 = vadd.f32 1.0, %v2732_v23 }
 0x872   : > { %v1811_v19 = vadd.f32 1.0, %v2734_v14  ;;  %v2736_v22 = vpop.eup %2735 }
 0x873   : > { %2739 = vrcp.f32 %v1805_v17  ;;  %v2738_v28 = vpop.eup %2737  ;;  %v1818_v25 = vadd.f32 1.0, %v2736_v22 }
 0x874   : > { %2741 = vrcp.f32 %v1811_v19 }
 0x875   : > { %2743 = vrcp.f32 %v1818_v25 }
 0x87d   : > { %v2740_v29 = vpop.eup %2739 }
 0x87e   : > { %v2742_v62 = vpop.eup %2741  ;;  %v1823_v7 = vmul.f32 %v2740_v29, %v2738_v28 }
 0x87f   : > { %v1822_v32 = vmul.f32 %v2742_v62, %v1645_v54  ;;  %v2744_v37 = vpop.eup %2743 }
 0x881   : > { %v1824_v30 = vadd.f32 %v1823_v7, %v1822_v32 }
 0x883   : > { %2745 = vtanh.f32 %v1824_v30 }
 0x88d   : > { %v2746_v33 = vpop.eup %2745 }
 0x88e   : > { %v1826_v41 = vmul.f32 %v2746_v33, %v2744_v37 }
 0x890   : > { %v1832_v0 = vsel %vm1831_vm15, %v1826_v41, %v1642_v45 }
 0x891   : > { %1841 = vst [vmem:[%s245_s29] sm:$0xff] %v1832_v0 }
 0x892   : > { %2820 = shalt.err (!%p2817_p11)
}
 0x893   : > { %s2821_s8 = scalar_lea.hbm %s3630_s18, 128  ;;  %s2825_s7 = scalar_lea.hbm %s3682_s3, 256 }
 0x894   : > { %p2822_p1 = scmp.ne.s32.totalorder %s3630_s18, %s2821_s8  ;;  %p2826_p5 = scmp.lt.u32.totalorder %s3630_s18, %s3682_s3 }
 0x895   : > { %p2827_p4 = scmp.lt.u32.totalorder %s2825_s7, %s2821_s8  ;;  %p2829_p0 = scmp.lt.u32.totalorder %s2821_s8, %s3630_s18 }
 0x896   : > { %p2823_p6 = pnand %p2822_p1, %p3693_p3 }
 0x897   : > { %p2828_p8 = por %p2827_p4, %p2826_p5 }
 0x898   : > { %p2824_p2 = pneg %p2823_p6 }
 0x899   : > { %p2830_p12 = por %p2829_p0, %p2828_p8 }
 0x89b   : > { %p2831_p13 = pnand %p2830_p12, %p2824_p2 }
 0x89d   : > { %2834 = shalt.err (!%p2831_p13)
}
 0x89e   : > { %2550 = dma.vmem_to_hbm [thread:$0]  (%p3693_p3), %s3632_s4, 128, %s3630_s18, %s1843_s30  }
 0x89f PF: > { %s1868_s9 = sand.u32 1, %s2873_s12   ;;  %p3694_p7 = scmp.ne.s32.totalorder %s3688_s27, 0 }
 0x8a0   : > { %p3695_p10 = scmp.ge.s32.totalorder %s2893_s17, 2  ;;  %s1869_s21 = scalar_lea.sflag [#allocation6], %s1868_s9 }
 0x8a2   : > { %p2560_p9 = pnand %p3695_p10, %p3694_p7 }
 0x8a4   : > { %2868 = dma.done.wait (!%p2560_p9), %s1869_s21, 128  }
 0x8a5   : > { %2870 = vsyncadd (!%p2560_p9), %s1869_s21, 4294967168  ;;  %s22_s17 = sadd.s32 1, %s2893_s17   ;;  %s3696_s12 = smov %s2877_s13 }
 0x8a6   : > { %p19_p11 = scmp.ge.s32.totalorder %s22_s17, 4   ;;  %s3697_s13 = smov %s2881_s14 }
 0x8a7   : > { %s3698_s14 = smov %s2978_s26  ;;  %s3699_s15 = smov %s2889_s16 }
 0x8a8   : > { %s3700_s16 = smov %s3702_s20  ;;  %21 = sbr.rel (!%p19_p11) target bundleno = 8 (0x8), region = 105 }
 0x8af   :  { %1874 = vsyncpa [#allocation5], 1 }
 0x8b0   :  { %1876 = vsyncpa [#allocation5 + $0x1], 1 }
 0x8b1   :  { %1877 = vsyncpa [#allocation8], 1 }
 0x8b2   :  { %1879 = vsyncpa [#allocation8 + $0x1], 1 }
 0x8b3   :  { %1880 = vsyncpa [#allocation6], 1 }
 0x8b4   :  { %1882 = vsyncpa [#allocation6 + $0x1], 1 }

</bundles_post_ra>
